<compile_context>
chip_gen: v7x
topology: tpu7x:2x2x1
jax: 0.10.0
libtpu: 0.0.40
codegen_flags: <defaults>
</compile_context>

<pallas_src>
import functools

import numpy as np
import jax
import jax.numpy as jnp
from jax import lax
from jax.experimental import pallas as pl
from jax.experimental.pallas import tpu as pltpu


# ---------------------------------------------------------------------------
# static tap / packing plans (pure Python; shared by kernel & param packing)
# ---------------------------------------------------------------------------

def _tconv_taps(p):
    """Valid kernel rows k (and source offsets g) of a stride-2, pad-1
    ConvTranspose hitting output rows of phase p: src = base + g,
    g = (p + 1 - k) // 2 for every k of matching parity."""
    return [(k, (p + 1 - k) // 2) for k in range(3) if (p + 1 - k) % 2 == 0]


def _enc2_plan():
    """Conv2d(64->128, s2, p1) taps grouped by (a1 slab, row shift, col
    shift) of the source slice; the two source column phases are packed
    into K (lanes [0:64] / [64:128] of a1)."""
    groups = {}
    for kh in range(3):
        pr_src, dr = (kh - 1) % 2, (kh - 1) // 2
        for kw in range(3):
            pc_src, dc = (kw - 1) % 2, (kw - 1) // 2
            groups.setdefault((pr_src, dr, dc), []).append((pc_src, kh, kw))
    return sorted(groups.items())


def _dec1_plan():
    """ConvTranspose2d(128->64) taps grouped by (output slab, src row shift,
    src col shift); the two output column phases are packed into N
    (lanes [0:64] / [64:128] of a3)."""
    groups = {}
    for pr in range(2):
        for pc in range(2):
            for kh, gr in _tconv_taps(pr):
                for kw, gc in _tconv_taps(pc):
                    groups.setdefault((pr, gr, gc), []).append((pc, kh, kw))
    return sorted(groups.items())


def _dec2_plan():
    """ConvTranspose2d(64->3) taps grouped by (a3 slab, row shift, col
    shift); K packs the two source column phases, N packs the 16 output
    spatial phases x 8 channel slots (3 real + 5 pad)."""
    groups = {}
    for s in range(4):
        for t in range(4):
            for kh, gr in _tconv_taps(s):
                for kw, gc in _tconv_taps(t):
                    key = (gr % 2, gr // 2, gc // 2)
                    groups.setdefault(key, []).append((gc % 2, s, t, kh, kw))
    return sorted(groups.items())


# ---------------------------------------------------------------------------
# fused forward kernel (one grid step == one image)
# ---------------------------------------------------------------------------

def _autoencoder_kernel(ht, wt,
                        xim_ref, mask_ref,
                        w1_ref, b1_ref, w2_ref, b2_ref,
                        w3_ref, b3_ref, w4_ref, b4_ref,
                        out_ref,
                        a1_ref, a2_ref, a3_ref):
    g = wt + 2                    # flat-row pitch of one padded tile row
    lo = g + 1                    # first real pixel row
    hi = ht * g + wt + 1          # one past the last real pixel row
    m = hi - lo                   # contiguous band covering all real pixels
    r = (ht + 2) * g
    f32 = jnp.float32

    maskb = mask_ref[lo:hi, :]    # (m,1) f32: 1.0 on real rows, 0.0 on halo
    b1 = b1_ref[...]
    b2 = b2_ref[...]
    b3 = b3_ref[...]
    b4 = b4_ref[...]

    # Zero only the out-of-band halo rows of the activation scratch.  The
    # in-band halo rows are re-zeroed by the mask multiply of every band
    # store, and out_ref's halo rows are dropped by the wrapper slice, so
    # no full-buffer memset is needed (megacore-safe: done every step).
    zpre = jnp.zeros((lo, 128), a1_ref.dtype)
    zpost = jnp.zeros((r - hi, 128), a1_ref.dtype)
    for s in range(2):
        a1_ref[s, :lo, :] = zpre
        a1_ref[s, hi:, :] = zpost
        a3_ref[s, :lo, :] = zpre
        a3_ref[s, hi:, :] = zpost
    a2_ref[:lo, :] = zpre
    a2_ref[hi:, :] = zpost

    def act(acc, bias):
        return jnp.maximum(acc + bias, 0.0) * maskb

    # ---- enc1: Conv2d(3->64, s2, p1) + ReLU --------------------------------
    # One K=64 im2col matmul per output row phase, both output column phases
    # packed into the 128 output lanes of a1.
    w1 = w1_ref[...]
    for pr in range(2):
        acc = jnp.dot(xim_ref[0, pr, lo:hi, :], w1, preferred_element_type=f32)
        a1_ref[pr, lo:hi, :] = act(acc, b1).astype(a1_ref.dtype)

    # ---- enc2: Conv2d(64->128, s2, p1) + ReLU ------------------------------
    acc = None
    for idx, ((pr_src, dr, dc), _) in enumerate(_enc2_plan()):
        off = lo + dr * g + dc
        d = jnp.dot(a1_ref[pr_src, off:off + m, :], w2_ref[idx],
                    preferred_element_type=f32)
        acc = d if acc is None else acc + d
    a2_ref[lo:hi, :] = act(acc, b2).astype(a2_ref.dtype)

    # ---- dec1: ConvTranspose2d(128->64, s2, p1, op1) + ReLU ----------------
    accs = [None, None]
    for idx, ((pr_out, dr, dc), _) in enumerate(_dec1_plan()):
        off = lo + dr * g + dc
        d = jnp.dot(a2_ref[off:off + m, :], w3_ref[idx],
                    preferred_element_type=f32)
        accs[pr_out] = d if accs[pr_out] is None else accs[pr_out] + d
    for pr_out in range(2):
        a3_ref[pr_out, lo:hi, :] = act(accs[pr_out], b3).astype(a3_ref.dtype)

    # ---- dec2: ConvTranspose2d(64->3, s2, p1, op1) + Sigmoid ---------------
    # Output lanes = 8 * (4*s + t) + c (16 spatial phases x 8 channel slots).
    acc = None
    for idx, ((pr_src, dr, dc), _) in enumerate(_dec2_plan()):
        off = lo + dr * g + dc
        d = jnp.dot(a3_ref[pr_src, off:off + m, :], w4_ref[idx],
                    preferred_element_type=f32)
        acc = d if acc is None else acc + d
    # no mask: halo rows / pad lanes are dropped by the wrapper slice
    out_ref[0, lo:hi, :] = jax.nn.sigmoid(acc + b4).astype(out_ref.dtype)


# ---------------------------------------------------------------------------
# JAX wrappers (layout plumbing only)
# ---------------------------------------------------------------------------

def _row_mask(ht, wt):
    """(r,1) f32 mask: 1.0 on real pixel rows of a padded-flat tile."""
    gcols = wt + 2
    rows = np.arange((ht + 2) * gcols)
    u, v = rows // gcols, rows % gcols
    real = (u >= 1) & (u <= ht) & (v >= 1) & (v <= wt)
    return jnp.asarray(real.astype(np.float32).reshape(-1, 1))


def _pallas_forward(xim, mask, p, ht, wt):
    n = xim.shape[0]
    r = (ht + 2) * (wt + 2)
    kernel = functools.partial(_autoencoder_kernel, ht, wt)
    return pl.pallas_call(
        kernel,
        out_shape=jax.ShapeDtypeStruct((n, r, 128), jnp.bfloat16),
        grid_spec=pltpu.PrefetchScalarGridSpec(
            num_scalar_prefetch=0,
            grid=(n,),
            in_specs=[
                pl.BlockSpec((1, 2, r, 64), lambda i: (i, 0, 0, 0)),
                pl.BlockSpec(mask.shape, lambda i: (0, 0)),
                pl.BlockSpec(p["w1"].shape, lambda i: (0, 0)),
                pl.BlockSpec(p["b1"].shape, lambda i: (0, 0)),
                pl.BlockSpec(p["w2"].shape, lambda i: (0, 0, 0)),
                pl.BlockSpec(p["b2"].shape, lambda i: (0, 0)),
                pl.BlockSpec(p["w3"].shape, lambda i: (0, 0, 0)),
                pl.BlockSpec(p["b3"].shape, lambda i: (0, 0)),
                pl.BlockSpec(p["w4"].shape, lambda i: (0, 0, 0)),
                pl.BlockSpec(p["b4"].shape, lambda i: (0, 0)),
            ],
            out_specs=pl.BlockSpec((1, r, 128), lambda i: (i, 0, 0)),
            scratch_shapes=[
                pltpu.VMEM((2, r, 128), jnp.bfloat16),   # a1 (col-phase packed)
                pltpu.VMEM((r, 128), jnp.bfloat16),      # a2
                pltpu.VMEM((2, r, 128), jnp.bfloat16),   # a3 (col-phase packed)
            ],
        ),
        compiler_params=pltpu.CompilerParams(
            dimension_semantics=("parallel",),
            vmem_limit_bytes=64 * 1024 * 1024,
        ),
    )(xim, mask, p["w1"], p["b1"], p["w2"], p["b2"],
      p["w3"], p["b3"], p["w4"], p["b4"])


def autoencoder_forward(x_nchw, prep):
    n, c, h, w = x_nchw.shape
    assert c == 3 and h % 4 == 0 and w % 4 == 0
    ht, wt = h // 4, w // 4
    r = (ht + 2) * (wt + 2)

    # Build the enc1 im2col input: for each output row phase pr, a flat
    # padded slab (r, 64) whose features [0:27] / [32:59] are the 3x3x3 taps
    # of output column phases pc=0 / pc=1.
    x = jnp.transpose(x_nchw, (0, 2, 3, 1))                    # NHWC
    xpad = jnp.pad(x, ((0, 0), (1, 1), (1, 1), (0, 0)))

    def gather(pr, pc):
        feats = []
        for kh in range(3):
            r0 = 2 * pr + kh
            rows = xpad[:, r0:r0 + 4 * (ht - 1) + 1:4, :, :]
            for kw in range(3):
                c0 = 2 * pc + kw
                feats.append(rows[:, :, c0:c0 + 4 * (wt - 1) + 1:4, :])
        return jnp.concatenate(feats, axis=-1)                 # (n, ht, wt, 27)

    slabs = []
    for pr in range(2):
        f0 = gather(pr, 0)
        f1 = gather(pr, 1)
        z5 = jnp.zeros(f0.shape[:-1] + (5,), f0.dtype)
        slab = jnp.concatenate([f0, z5, f1, z5], axis=-1)      # (n, ht, wt, 64)
        slab = jnp.pad(slab, ((0, 0), (1, 1), (1, 1), (0, 0)))
        slabs.append(slab.reshape(n, r, 64))
    xim = jnp.stack(slabs, axis=1).astype(jnp.bfloat16)        # (n, 2, r, 64)

    out = _pallas_forward(xim, _row_mask(ht, wt), prep, ht, wt)  # (n, r, 128) bf16

    # Unpack: drop halo rows + padded channel slots, re-interleave phases.
    y = out.reshape(n, ht + 2, wt + 2, 16, 8)
    y = y[:, 1:ht + 1, 1:wt + 1, :, :3].astype(jnp.float32)    # (n, u, v, 16, 3)
    y = y.reshape(n, ht, wt, 4, 4, 3)                          # (n, u, v, s, t, c)
    y = jnp.transpose(y, (0, 1, 3, 2, 4, 5))                   # (n, u, s, v, t, c)
    y = y.reshape(n, h, w, 3)
    return jnp.transpose(y, (0, 3, 1, 2))                      # NCHW


def prepare_params(params):
    """One-time conversion of PyTorch-layout weights into the phase-packed
    kernel layouts (static; ordering matches the *_plan() functions)."""
    f32 = np.float32

    # enc1: fold 3x3x3 taps into 27 features, pack both output column phases
    w1 = np.asarray(params["enc1_w"], f32)                     # (64,3,3,3) OIHW
    w1f = np.transpose(w1, (2, 3, 1, 0)).reshape(27, 64)       # (kh,kw,cin) x cout
    w1p = np.zeros((64, 128), f32)
    w1p[0:27, 0:64] = w1f
    w1p[32:59, 64:128] = w1f
    b1 = np.asarray(params["enc1_b"], f32)
    b1p = np.concatenate([b1, b1]).reshape(1, 128)

    # enc2: K packs source column phases
    w2 = np.asarray(params["enc2_w"], f32)                     # (128,64,3,3)
    w2t = np.transpose(w2, (2, 3, 1, 0))                       # (3,3,64,128)
    enc2_ws = []
    for _, taps in _enc2_plan():
        wk = np.zeros((128, 128), f32)
        for pc_src, kh, kw in taps:
            wk[64 * pc_src:64 * pc_src + 64, :] += w2t[kh, kw]
        enc2_ws.append(wk)
    w2p = np.stack(enc2_ws)                                    # (6,128,128)
    b2p = np.asarray(params["enc2_b"], f32).reshape(1, 128)

    # dec1: N packs output column phases
    v1 = np.asarray(params["dec1_w"], f32)                     # (128,64,3,3) (Cin,Cout,kh,kw)
    v1t = np.transpose(v1, (2, 3, 0, 1))                       # (3,3,128,64)
    dec1_ws = []
    for _, taps in _dec1_plan():
        wk = np.zeros((128, 128), f32)
        for pc_out, kh, kw in taps:
            wk[:, 64 * pc_out:64 * pc_out + 64] += v1t[kh, kw]
        dec1_ws.append(wk)
    w3p = np.stack(dec1_ws)                                    # (6,128,128)
    b3 = np.asarray(params["dec1_b"], f32)
    b3p = np.concatenate([b3, b3]).reshape(1, 128)

    # dec2: K packs source column phases, N packs 16 output phases x 8 slots
    v2 = np.asarray(params["dec2_w"], f32)                     # (64,3,3,3)
    v2t = np.transpose(v2, (2, 3, 0, 1))                       # (3,3,64,3)
    dec2_ws = []
    for _, taps in _dec2_plan():
        wk = np.zeros((128, 128), f32)
        for pc_src, s, t, kh, kw in taps:
            col = 8 * (4 * s + t)
            wk[64 * pc_src:64 * pc_src + 64, col:col + 3] += v2t[kh, kw]
        dec2_ws.append(wk)
    w4p = np.stack(dec2_ws)                                    # (6,128,128)
    b4 = np.asarray(params["dec2_b"], f32)
    b4p = np.zeros((1, 128), f32)
    for ph in range(16):
        b4p[0, 8 * ph:8 * ph + 3] = b4

    bf16, f32j = jnp.bfloat16, jnp.float32
    return {
        "w1": jnp.asarray(w1p, bf16), "b1": jnp.asarray(b1p, f32j),
        "w2": jnp.asarray(w2p, bf16), "b2": jnp.asarray(b2p, f32j),
        "w3": jnp.asarray(w3p, bf16), "b3": jnp.asarray(b3p, f32j),
        "w4": jnp.asarray(w4p, bf16), "b4": jnp.asarray(b4p, f32j),
    }


# ---------------------------------------------------------------------------
# deterministic params + pure-XLA reference (for in-script validation)
# ---------------------------------------------------------------------------

def init_params(key):
    ks = jax.random.split(key, 8)

    def u(k, shape, fan_in):
        bound = 1.0 / (fan_in ** 0.5)
        return jax.random.uniform(k, shape, jnp.float32, -bound, bound)

    return {
        "enc1_w": u(ks[0], (64, 3, 3, 3), 3 * 9),
        "enc1_b": u(ks[1], (64,), 3 * 9),
        "enc2_w": u(ks[2], (128, 64, 3, 3), 64 * 9),
        "enc2_b": u(ks[3], (128,), 64 * 9),
        "dec1_w": u(ks[4], (128, 64, 3, 3), 128 * 9),
        "dec1_b": u(ks[5], (64,), 64 * 9),
        "dec2_w": u(ks[6], (64, 3, 3, 3), 64 * 9),
        "dec2_b": u(ks[7], (3,), 3 * 9),
    }


def reference_forward(x, params):
    dn = ("NCHW", "OIHW", "NCHW")

    def conv(x, w, b):
        y = lax.conv_general_dilated(x, w, (2, 2), ((1, 1), (1, 1)),
                                     dimension_numbers=dn)
        return y + b[None, :, None, None]

    def tconv(x, w, b):
        wf = jnp.flip(jnp.transpose(w, (1, 0, 2, 3)), (2, 3))
        y = lax.conv_general_dilated(x, wf, (1, 1), ((1, 2), (1, 2)),
                                     lhs_dilation=(2, 2), dimension_numbers=dn)
        return y + b[None, :, None, None]

    y = jax.nn.relu(conv(x, params["enc1_w"], params["enc1_b"]))
    y = jax.nn.relu(conv(y, params["enc2_w"], params["enc2_b"]))
    y = jax.nn.relu(tconv(y, params["dec1_w"], params["dec1_b"]))
    return jax.nn.sigmoid(tconv(y, params["dec2_w"], params["dec2_b"]))


if __name__ == "__main__":
    key = jax.random.PRNGKey(0)
    kx, kp = jax.random.split(key)
    x = jax.random.normal(kx, (2, 3, 16, 16), jnp.float32)  # NCHW like PyTorch
    params = init_params(kp)
    prep = prepare_params(params)

    fwd = jax.jit(autoencoder_forward)
    y = jax.block_until_ready(fwd(x, prep))

    assert y.shape == (2, 3, 16, 16), y.shape
    assert bool(jnp.all(jnp.isfinite(y)))
    assert bool(jnp.all((y >= 0.0) & (y <= 1.0)))           # sigmoid range

    # numerical check against a pure-XLA f32 reference
    # (bf16 MXU operands / bf16 intermediates -> loose tolerance, intentional)
    y_ref = reference_forward(x, params)
    err = float(jnp.max(jnp.abs(y - y_ref)))
    assert err < 6e-2, f"max abs error vs reference: {err}"

    print("KERNEL_OK")
</pallas_src>

<mosaic_0001>
module attributes {stable_mosaic.version = 11 : i64} {
  func.func @_autoencoder_kernel(%arg0: i32, %arg1: memref<1x2x36x64xbf16, #tpu.memory_space<vmem>>, %arg2: memref<36x1xf32, #tpu.memory_space<vmem>>, %arg3: memref<64x128xbf16, #tpu.memory_space<vmem>>, %arg4: memref<1x128xf32, #tpu.memory_space<vmem>>, %arg5: memref<6x128x128xbf16, #tpu.memory_space<vmem>>, %arg6: memref<1x128xf32, #tpu.memory_space<vmem>>, %arg7: memref<6x128x128xbf16, #tpu.memory_space<vmem>>, %arg8: memref<1x128xf32, #tpu.memory_space<vmem>>, %arg9: memref<6x128x128xbf16, #tpu.memory_space<vmem>>, %arg10: memref<1x128xf32, #tpu.memory_space<vmem>>, %arg11: memref<1x36x128xbf16, #tpu.memory_space<vmem>>, %arg12: memref<2x36x128xbf16, #tpu.memory_space<vmem>>, %arg13: memref<36x128xbf16, #tpu.memory_space<vmem>>, %arg14: memref<2x36x128xbf16, #tpu.memory_space<vmem>>) attributes {dimension_semantics = [#tpu.dimension_semantics<parallel>], iteration_bounds = array<i64: 2>, scalar_prefetch = 0 : i64, scratch_operands = 3 : i64, tpu.core_type = #tpu.core_type<tc>, window_params = [{transform_indices = @transform_0, window_bounds = array<i64: 1, 2, 36, 64>}, {pipeline_mode = #tpu.pipeline_mode<synchronous>, transform_indices = @transform_1, window_bounds = array<i64: 36, 1>}, {pipeline_mode = #tpu.pipeline_mode<synchronous>, transform_indices = @transform_2, window_bounds = array<i64: 64, 128>}, {pipeline_mode = #tpu.pipeline_mode<synchronous>, transform_indices = @transform_3, window_bounds = array<i64: 1, 128>}, {pipeline_mode = #tpu.pipeline_mode<synchronous>, transform_indices = @transform_4, window_bounds = array<i64: 6, 128, 128>}, {pipeline_mode = #tpu.pipeline_mode<synchronous>, transform_indices = @transform_5, window_bounds = array<i64: 1, 128>}, {pipeline_mode = #tpu.pipeline_mode<synchronous>, transform_indices = @transform_6, window_bounds = array<i64: 6, 128, 128>}, {pipeline_mode = #tpu.pipeline_mode<synchronous>, transform_indices = @transform_7, window_bounds = array<i64: 1, 128>}, {pipeline_mode = #tpu.pipeline_mode<synchronous>, transform_indices = @transform_8, window_bounds = array<i64: 6, 128, 128>}, {pipeline_mode = #tpu.pipeline_mode<synchronous>, transform_indices = @transform_9, window_bounds = array<i64: 1, 128>}, {transform_indices = @transform_10, window_bounds = array<i64: 1, 36, 128>}]} {
    %c7 = arith.constant 7 : index
    %c0 = arith.constant 0 : index
    %0 = vector.load %arg2[%c7, %c0] : memref<36x1xf32, #tpu.memory_space<vmem>>, vector<22x1xf32>
    %c0_0 = arith.constant 0 : index
    %c0_1 = arith.constant 0 : index
    %1 = vector.load %arg4[%c0_0, %c0_1] : memref<1x128xf32, #tpu.memory_space<vmem>>, vector<1x128xf32>
    %c0_2 = arith.constant 0 : index
    %c0_3 = arith.constant 0 : index
    %2 = vector.load %arg6[%c0_2, %c0_3] : memref<1x128xf32, #tpu.memory_space<vmem>>, vector<1x128xf32>
    %c0_4 = arith.constant 0 : index
    %c0_5 = arith.constant 0 : index
    %3 = vector.load %arg8[%c0_4, %c0_5] : memref<1x128xf32, #tpu.memory_space<vmem>>, vector<1x128xf32>
    %c0_6 = arith.constant 0 : index
    %c0_7 = arith.constant 0 : index
    %4 = vector.load %arg10[%c0_6, %c0_7] : memref<1x128xf32, #tpu.memory_space<vmem>>, vector<1x128xf32>
    %cst = arith.constant 0.000000e+00 : bf16
    %5 = vector.broadcast %cst : bf16 to vector<7x128xbf16>
    %cst_8 = arith.constant 0.000000e+00 : bf16
    %6 = vector.broadcast %cst_8 : bf16 to vector<7x128xbf16>
    %c0_9 = arith.constant 0 : index
    %c0_10 = arith.constant 0 : index
    %c0_11 = arith.constant 0 : index
    %7 = vector.load %arg12[%c0_9, %c0_10, %c0_11] : memref<2x36x128xbf16, #tpu.memory_space<vmem>>, vector<1x7x128xbf16>
    %8 = vector.shape_cast %7 : vector<1x7x128xbf16> to vector<7x128xbf16>
    %9 = vector.shape_cast %5 : vector<7x128xbf16> to vector<1x7x128xbf16>
    tpu.vector_store %arg12[%c0_9, %c0_10, %c0_11], %9 {strides = array<i32>} : memref<2x36x128xbf16, #tpu.memory_space<vmem>>, vector<1x7x128xbf16>,
    %c0_12 = arith.constant 0 : index
    %c29 = arith.constant 29 : index
    %c0_13 = arith.constant 0 : index
    %10 = vector.load %arg12[%c0_12, %c29, %c0_13] : memref<2x36x128xbf16, #tpu.memory_space<vmem>>, vector<1x7x128xbf16>
    %11 = vector.shape_cast %10 : vector<1x7x128xbf16> to vector<7x128xbf16>
    %12 = vector.shape_cast %6 : vector<7x128xbf16> to vector<1x7x128xbf16>
    tpu.vector_store %arg12[%c0_12, %c29, %c0_13], %12 {strides = array<i32>} : memref<2x36x128xbf16, #tpu.memory_space<vmem>>, vector<1x7x128xbf16>,
    %c0_14 = arith.constant 0 : index
    %c0_15 = arith.constant 0 : index
    %c0_16 = arith.constant 0 : index
    %13 = vector.load %arg14[%c0_14, %c0_15, %c0_16] : memref<2x36x128xbf16, #tpu.memory_space<vmem>>, vector<1x7x128xbf16>
    %14 = vector.shape_cast %13 : vector<1x7x128xbf16> to vector<7x128xbf16>
    %15 = vector.shape_cast %5 : vector<7x128xbf16> to vector<1x7x128xbf16>
    tpu.vector_store %arg14[%c0_14, %c0_15, %c0_16], %15 {strides = array<i32>} : memref<2x36x128xbf16, #tpu.memory_space<vmem>>, vector<1x7x128xbf16>,
    %c0_17 = arith.constant 0 : index
    %c29_18 = arith.constant 29 : index
    %c0_19 = arith.constant 0 : index
    %16 = vector.load %arg14[%c0_17, %c29_18, %c0_19] : memref<2x36x128xbf16, #tpu.memory_space<vmem>>, vector<1x7x128xbf16>
    %17 = vector.shape_cast %16 : vector<1x7x128xbf16> to vector<7x128xbf16>
    %18 = vector.shape_cast %6 : vector<7x128xbf16> to vector<1x7x128xbf16>
    tpu.vector_store %arg14[%c0_17, %c29_18, %c0_19], %18 {strides = array<i32>} : memref<2x36x128xbf16, #tpu.memory_space<vmem>>, vector<1x7x128xbf16>,
    %c1 = arith.constant 1 : index
    %c0_20 = arith.constant 0 : index
    %c0_21 = arith.constant 0 : index
    %19 = vector.load %arg12[%c1, %c0_20, %c0_21] : memref<2x36x128xbf16, #tpu.memory_space<vmem>>, vector<1x7x128xbf16>
    %20 = vector.shape_cast %19 : vector<1x7x128xbf16> to vector<7x128xbf16>
    %21 = vector.shape_cast %5 : vector<7x128xbf16> to vector<1x7x128xbf16>
    tpu.vector_store %arg12[%c1, %c0_20, %c0_21], %21 {strides = array<i32>} : memref<2x36x128xbf16, #tpu.memory_space<vmem>>, vector<1x7x128xbf16>,
    %c1_22 = arith.constant 1 : index
    %c29_23 = arith.constant 29 : index
    %c0_24 = arith.constant 0 : index
    %22 = vector.load %arg12[%c1_22, %c29_23, %c0_24] : memref<2x36x128xbf16, #tpu.memory_space<vmem>>, vector<1x7x128xbf16>
    %23 = vector.shape_cast %22 : vector<1x7x128xbf16> to vector<7x128xbf16>
    %24 = vector.shape_cast %6 : vector<7x128xbf16> to vector<1x7x128xbf16>
    tpu.vector_store %arg12[%c1_22, %c29_23, %c0_24], %24 {strides = array<i32>} : memref<2x36x128xbf16, #tpu.memory_space<vmem>>, vector<1x7x128xbf16>,
    %c1_25 = arith.constant 1 : index
    %c0_26 = arith.constant 0 : index
    %c0_27 = arith.constant 0 : index
    %25 = vector.load %arg14[%c1_25, %c0_26, %c0_27] : memref<2x36x128xbf16, #tpu.memory_space<vmem>>, vector<1x7x128xbf16>
    %26 = vector.shape_cast %25 : vector<1x7x128xbf16> to vector<7x128xbf16>
    %27 = vector.shape_cast %5 : vector<7x128xbf16> to vector<1x7x128xbf16>
    tpu.vector_store %arg14[%c1_25, %c0_26, %c0_27], %27 {strides = array<i32>} : memref<2x36x128xbf16, #tpu.memory_space<vmem>>, vector<1x7x128xbf16>,
    %c1_28 = arith.constant 1 : index
    %c29_29 = arith.constant 29 : index
    %c0_30 = arith.constant 0 : index
    %28 = vector.load %arg14[%c1_28, %c29_29, %c0_30] : memref<2x36x128xbf16, #tpu.memory_space<vmem>>, vector<1x7x128xbf16>
    %29 = vector.shape_cast %28 : vector<1x7x128xbf16> to vector<7x128xbf16>
    %30 = vector.shape_cast %6 : vector<7x128xbf16> to vector<1x7x128xbf16>
    tpu.vector_store %arg14[%c1_28, %c29_29, %c0_30], %30 {strides = array<i32>} : memref<2x36x128xbf16, #tpu.memory_space<vmem>>, vector<1x7x128xbf16>,
    %c0_31 = arith.constant 0 : index
    %c0_32 = arith.constant 0 : index
    %31 = vector.load %arg13[%c0_31, %c0_32] : memref<36x128xbf16, #tpu.memory_space<vmem>>, vector<7x128xbf16>
    tpu.vector_store %arg13[%c0_31, %c0_32], %5 {strides = array<i32>} : memref<36x128xbf16, #tpu.memory_space<vmem>>, vector<7x128xbf16>,
    %c29_33 = arith.constant 29 : index
    %c0_34 = arith.constant 0 : index
    %32 = vector.load %arg13[%c29_33, %c0_34] : memref<36x128xbf16, #tpu.memory_space<vmem>>, vector<7x128xbf16>
    tpu.vector_store %arg13[%c29_33, %c0_34], %6 {strides = array<i32>} : memref<36x128xbf16, #tpu.memory_space<vmem>>, vector<7x128xbf16>,
    %c0_35 = arith.constant 0 : index
    %c0_36 = arith.constant 0 : index
    %33 = vector.load %arg3[%c0_35, %c0_36] : memref<64x128xbf16, #tpu.memory_space<vmem>>, vector<64x128xbf16>
    %c0_37 = arith.constant 0 : index
    %c0_38 = arith.constant 0 : index
    %c7_39 = arith.constant 7 : index
    %c0_40 = arith.constant 0 : index
    %34 = vector.load %arg1[%c0_37, %c0_38, %c7_39, %c0_40] : memref<1x2x36x64xbf16, #tpu.memory_space<vmem>>, vector<1x1x22x64xbf16>
    %35 = vector.shape_cast %34 : vector<1x1x22x64xbf16> to vector<22x64xbf16>
    %cst_41 = arith.constant dense<0.000000e+00> : vector<22x128xf32>
    %36 = tpu.matmul %35, %33, %cst_41 {dimension_numbers = #tpu.dot_dimension_numbers<[1], [0], [0], [1], [0, 0, 1, 1], [], []>} : vector<22x64xbf16>, vector<64x128xbf16>, vector<22x128xf32> -> vector<22x128xf32>
    %37 = vector.broadcast %1 : vector<1x128xf32> to vector<22x128xf32>
    %38 = arith.addf %36, %37 : vector<22x128xf32>
    %cst_42 = arith.constant 0.000000e+00 : f32
    %39 = vector.broadcast %cst_42 : f32 to vector<22x128xf32>
    %40 = arith.maximumf %38, %39 : vector<22x128xf32>
    %41 = vector.broadcast %0 : vector<22x1xf32> to vector<22x128xf32>
    %42 = arith.mulf %40, %41 : vector<22x128xf32>
    %43 = arith.truncf %42 : vector<22x128xf32> to vector<22x128xbf16>
    %c0_43 = arith.constant 0 : index
    %c7_44 = arith.constant 7 : index
    %c0_45 = arith.constant 0 : index
    %44 = vector.load %arg12[%c0_43, %c7_44, %c0_45] : memref<2x36x128xbf16, #tpu.memory_space<vmem>>, vector<1x22x128xbf16>
    %45 = vector.shape_cast %44 : vector<1x22x128xbf16> to vector<22x128xbf16>
    %46 = vector.shape_cast %43 : vector<22x128xbf16> to vector<1x22x128xbf16>
    tpu.vector_store %arg12[%c0_43, %c7_44, %c0_45], %46 {strides = array<i32>} : memref<2x36x128xbf16, #tpu.memory_space<vmem>>, vector<1x22x128xbf16>,
    %c0_46 = arith.constant 0 : index
    %c1_47 = arith.constant 1 : index
    %c7_48 = arith.constant 7 : index
    %c0_49 = arith.constant 0 : index
    %47 = vector.load %arg1[%c0_46, %c1_47, %c7_48, %c0_49] : memref<1x2x36x64xbf16, #tpu.memory_space<vmem>>, vector<1x1x22x64xbf16>
    %48 = vector.shape_cast %47 : vector<1x1x22x64xbf16> to vector<22x64xbf16>
    %cst_50 = arith.constant dense<0.000000e+00> : vector<22x128xf32>
    %49 = tpu.matmul %48, %33, %cst_50 {dimension_numbers = #tpu.dot_dimension_numbers<[1], [0], [0], [1], [0, 0, 1, 1], [], []>} : vector<22x64xbf16>, vector<64x128xbf16>, vector<22x128xf32> -> vector<22x128xf32>
    %50 = vector.broadcast %1 : vector<1x128xf32> to vector<22x128xf32>
    %51 = arith.addf %49, %50 : vector<22x128xf32>
    %cst_51 = arith.constant 0.000000e+00 : f32
    %52 = vector.broadcast %cst_51 : f32 to vector<22x128xf32>
    %53 = arith.maximumf %51, %52 : vector<22x128xf32>
    %54 = vector.broadcast %0 : vector<22x1xf32> to vector<22x128xf32>
    %55 = arith.mulf %53, %54 : vector<22x128xf32>
    %56 = arith.truncf %55 : vector<22x128xf32> to vector<22x128xbf16>
    %c1_52 = arith.constant 1 : index
    %c7_53 = arith.constant 7 : index
    %c0_54 = arith.constant 0 : index
    %57 = vector.load %arg12[%c1_52, %c7_53, %c0_54] : memref<2x36x128xbf16, #tpu.memory_space<vmem>>, vector<1x22x128xbf16>
    %58 = vector.shape_cast %57 : vector<1x22x128xbf16> to vector<22x128xbf16>
    %59 = vector.shape_cast %56 : vector<22x128xbf16> to vector<1x22x128xbf16>
    tpu.vector_store %arg12[%c1_52, %c7_53, %c0_54], %59 {strides = array<i32>} : memref<2x36x128xbf16, #tpu.memory_space<vmem>>, vector<1x22x128xbf16>,
    %c0_55 = arith.constant 0 : index
    %c6 = arith.constant 6 : index
    %c0_56 = arith.constant 0 : index
    %60 = vector.load %arg12[%c0_55, %c6, %c0_56] : memref<2x36x128xbf16, #tpu.memory_space<vmem>>, vector<1x22x128xbf16>
    %61 = vector.shape_cast %60 : vector<1x22x128xbf16> to vector<22x128xbf16>
    %c0_57 = arith.constant 0 : index
    %c0_58 = arith.constant 0 : index
    %c0_59 = arith.constant 0 : index
    %62 = vector.load %arg5[%c0_57, %c0_58, %c0_59] : memref<6x128x128xbf16, #tpu.memory_space<vmem>>, vector<1x128x128xbf16>
    %63 = vector.shape_cast %62 : vector<1x128x128xbf16> to vector<128x128xbf16>
    %cst_60 = arith.constant dense<0.000000e+00> : vector<22x128xf32>
    %64 = tpu.matmul %61, %63, %cst_60 {dimension_numbers = #tpu.dot_dimension_numbers<[1], [0], [0], [1], [0, 0, 1, 1], [], []>} : vector<22x128xbf16>, vector<128x128xbf16>, vector<22x128xf32> -> vector<22x128xf32>
    %c0_61 = arith.constant 0 : index
    %c7_62 = arith.constant 7 : index
    %c0_63 = arith.constant 0 : index
    %65 = vector.load %arg12[%c0_61, %c7_62, %c0_63] : memref<2x36x128xbf16, #tpu.memory_space<vmem>>, vector<1x22x128xbf16>
    %66 = vector.shape_cast %65 : vector<1x22x128xbf16> to vector<22x128xbf16>
    %c1_64 = arith.constant 1 : index
    %c0_65 = arith.constant 0 : index
    %c0_66 = arith.constant 0 : index
    %67 = vector.load %arg5[%c1_64, %c0_65, %c0_66] : memref<6x128x128xbf16, #tpu.memory_space<vmem>>, vector<1x128x128xbf16>
    %68 = vector.shape_cast %67 : vector<1x128x128xbf16> to vector<128x128xbf16>
    %cst_67 = arith.constant dense<0.000000e+00> : vector<22x128xf32>
    %69 = tpu.matmul %66, %68, %cst_67 {dimension_numbers = #tpu.dot_dimension_numbers<[1], [0], [0], [1], [0, 0, 1, 1], [], []>} : vector<22x128xbf16>, vector<128x128xbf16>, vector<22x128xf32> -> vector<22x128xf32>
    %70 = arith.addf %64, %69 : vector<22x128xf32>
    %c1_68 = arith.constant 1 : index
    %c0_69 = arith.constant 0 : index
    %c0_70 = arith.constant 0 : index
    %71 = vector.load %arg12[%c1_68, %c0_69, %c0_70] : memref<2x36x128xbf16, #tpu.memory_space<vmem>>, vector<1x22x128xbf16>
    %72 = vector.shape_cast %71 : vector<1x22x128xbf16> to vector<22x128xbf16>
    %c2 = arith.constant 2 : index
    %c0_71 = arith.constant 0 : index
    %c0_72 = arith.constant 0 : index
    %73 = vector.load %arg5[%c2, %c0_71, %c0_72] : memref<6x128x128xbf16, #tpu.memory_space<vmem>>, vector<1x128x128xbf16>
    %74 = vector.shape_cast %73 : vector<1x128x128xbf16> to vector<128x128xbf16>
    %cst_73 = arith.constant dense<0.000000e+00> : vector<22x128xf32>
    %75 = tpu.matmul %72, %74, %cst_73 {dimension_numbers = #tpu.dot_dimension_numbers<[1], [0], [0], [1], [0, 0, 1, 1], [], []>} : vector<22x128xbf16>, vector<128x128xbf16>, vector<22x128xf32> -> vector<22x128xf32>
    %76 = arith.addf %70, %75 : vector<22x128xf32>
    %c1_74 = arith.constant 1 : index
    %c1_75 = arith.constant 1 : index
    %c0_76 = arith.constant 0 : index
    %77 = vector.load %arg12[%c1_74, %c1_75, %c0_76] : memref<2x36x128xbf16, #tpu.memory_space<vmem>>, vector<1x22x128xbf16>
    %78 = vector.shape_cast %77 : vector<1x22x128xbf16> to vector<22x128xbf16>
    %c3 = arith.constant 3 : index
    %c0_77 = arith.constant 0 : index
    %c0_78 = arith.constant 0 : index
    %79 = vector.load %arg5[%c3, %c0_77, %c0_78] : memref<6x128x128xbf16, #tpu.memory_space<vmem>>, vector<1x128x128xbf16>
    %80 = vector.shape_cast %79 : vector<1x128x128xbf16> to vector<128x128xbf16>
    %cst_79 = arith.constant dense<0.000000e+00> : vector<22x128xf32>
    %81 = tpu.matmul %78, %80, %cst_79 {dimension_numbers = #tpu.dot_dimension_numbers<[1], [0], [0], [1], [0, 0, 1, 1], [], []>} : vector<22x128xbf16>, vector<128x128xbf16>, vector<22x128xf32> -> vector<22x128xf32>
    %82 = arith.addf %76, %81 : vector<22x128xf32>
    %c1_80 = arith.constant 1 : index
    %c6_81 = arith.constant 6 : index
    %c0_82 = arith.constant 0 : index
    %83 = vector.load %arg12[%c1_80, %c6_81, %c0_82] : memref<2x36x128xbf16, #tpu.memory_space<vmem>>, vector<1x22x128xbf16>
    %84 = vector.shape_cast %83 : vector<1x22x128xbf16> to vector<22x128xbf16>
    %c4 = arith.constant 4 : index
    %c0_83 = arith.constant 0 : index
    %c0_84 = arith.constant 0 : index
    %85 = vector.load %arg5[%c4, %c0_83, %c0_84] : memref<6x128x128xbf16, #tpu.memory_space<vmem>>, vector<1x128x128xbf16>
    %86 = vector.shape_cast %85 : vector<1x128x128xbf16> to vector<128x128xbf16>
    %cst_85 = arith.constant dense<0.000000e+00> : vector<22x128xf32>
    %87 = tpu.matmul %84, %86, %cst_85 {dimension_numbers = #tpu.dot_dimension_numbers<[1], [0], [0], [1], [0, 0, 1, 1], [], []>} : vector<22x128xbf16>, vector<128x128xbf16>, vector<22x128xf32> -> vector<22x128xf32>
    %88 = arith.addf %82, %87 : vector<22x128xf32>
    %c1_86 = arith.constant 1 : index
    %c7_87 = arith.constant 7 : index
    %c0_88 = arith.constant 0 : index
    %89 = vector.load %arg12[%c1_86, %c7_87, %c0_88] : memref<2x36x128xbf16, #tpu.memory_space<vmem>>, vector<1x22x128xbf16>
    %90 = vector.shape_cast %89 : vector<1x22x128xbf16> to vector<22x128xbf16>
    %c5 = arith.constant 5 : index
    %c0_89 = arith.constant 0 : index
    %c0_90 = arith.constant 0 : index
    %91 = vector.load %arg5[%c5, %c0_89, %c0_90] : memref<6x128x128xbf16, #tpu.memory_space<vmem>>, vector<1x128x128xbf16>
    %92 = vector.shape_cast %91 : vector<1x128x128xbf16> to vector<128x128xbf16>
    %cst_91 = arith.constant dense<0.000000e+00> : vector<22x128xf32>
    %93 = tpu.matmul %90, %92, %cst_91 {dimension_numbers = #tpu.dot_dimension_numbers<[1], [0], [0], [1], [0, 0, 1, 1], [], []>} : vector<22x128xbf16>, vector<128x128xbf16>, vector<22x128xf32> -> vector<22x128xf32>
    %94 = arith.addf %88, %93 : vector<22x128xf32>
    %95 = vector.broadcast %2 : vector<1x128xf32> to vector<22x128xf32>
    %96 = arith.addf %94, %95 : vector<22x128xf32>
    %cst_92 = arith.constant 0.000000e+00 : f32
    %97 = vector.broadcast %cst_92 : f32 to vector<22x128xf32>
    %98 = arith.maximumf %96, %97 : vector<22x128xf32>
    %99 = vector.broadcast %0 : vector<22x1xf32> to vector<22x128xf32>
    %100 = arith.mulf %98, %99 : vector<22x128xf32>
    %101 = arith.truncf %100 : vector<22x128xf32> to vector<22x128xbf16>
    %c7_93 = arith.constant 7 : index
    %c0_94 = arith.constant 0 : index
    %102 = vector.load %arg13[%c7_93, %c0_94] : memref<36x128xbf16, #tpu.memory_space<vmem>>, vector<22x128xbf16>
    tpu.vector_store %arg13[%c7_93, %c0_94], %101 {strides = array<i32>} : memref<36x128xbf16, #tpu.memory_space<vmem>>, vector<22x128xbf16>,
    %c7_95 = arith.constant 7 : index
    %c0_96 = arith.constant 0 : index
    %103 = vector.load %arg13[%c7_95, %c0_96] : memref<36x128xbf16, #tpu.memory_space<vmem>>, vector<22x128xbf16>
    %c0_97 = arith.constant 0 : index
    %c0_98 = arith.constant 0 : index
    %c0_99 = arith.constant 0 : index
    %104 = vector.load %arg7[%c0_97, %c0_98, %c0_99] : memref<6x128x128xbf16, #tpu.memory_space<vmem>>, vector<1x128x128xbf16>
    %105 = vector.shape_cast %104 : vector<1x128x128xbf16> to vector<128x128xbf16>
    %cst_100 = arith.constant dense<0.000000e+00> : vector<22x128xf32>
    %106 = tpu.matmul %103, %105, %cst_100 {dimension_numbers = #tpu.dot_dimension_numbers<[1], [0], [0], [1], [0, 0, 1, 1], [], []>} : vector<22x128xbf16>, vector<128x128xbf16>, vector<22x128xf32> -> vector<22x128xf32>
    %c8 = arith.constant 8 : index
    %c0_101 = arith.constant 0 : index
    %107 = vector.load %arg13[%c8, %c0_101] : memref<36x128xbf16, #tpu.memory_space<vmem>>, vector<22x128xbf16>
    %c1_102 = arith.constant 1 : index
    %c0_103 = arith.constant 0 : index
    %c0_104 = arith.constant 0 : index
    %108 = vector.load %arg7[%c1_102, %c0_103, %c0_104] : memref<6x128x128xbf16, #tpu.memory_space<vmem>>, vector<1x128x128xbf16>
    %109 = vector.shape_cast %108 : vector<1x128x128xbf16> to vector<128x128xbf16>
    %cst_105 = arith.constant dense<0.000000e+00> : vector<22x128xf32>
    %110 = tpu.matmul %107, %109, %cst_105 {dimension_numbers = #tpu.dot_dimension_numbers<[1], [0], [0], [1], [0, 0, 1, 1], [], []>} : vector<22x128xbf16>, vector<128x128xbf16>, vector<22x128xf32> -> vector<22x128xf32>
    %111 = arith.addf %106, %110 : vector<22x128xf32>
    %c7_106 = arith.constant 7 : index
    %c0_107 = arith.constant 0 : index
    %112 = vector.load %arg13[%c7_106, %c0_107] : memref<36x128xbf16, #tpu.memory_space<vmem>>, vector<22x128xbf16>
    %c2_108 = arith.constant 2 : index
    %c0_109 = arith.constant 0 : index
    %c0_110 = arith.constant 0 : index
    %113 = vector.load %arg7[%c2_108, %c0_109, %c0_110] : memref<6x128x128xbf16, #tpu.memory_space<vmem>>, vector<1x128x128xbf16>
    %114 = vector.shape_cast %113 : vector<1x128x128xbf16> to vector<128x128xbf16>
    %cst_111 = arith.constant dense<0.000000e+00> : vector<22x128xf32>
    %115 = tpu.matmul %112, %114, %cst_111 {dimension_numbers = #tpu.dot_dimension_numbers<[1], [0], [0], [1], [0, 0, 1, 1], [], []>} : vector<22x128xbf16>, vector<128x128xbf16>, vector<22x128xf32> -> vector<22x128xf32>
    %c8_112 = arith.constant 8 : index
    %c0_113 = arith.constant 0 : index
    %116 = vector.load %arg13[%c8_112, %c0_113] : memref<36x128xbf16, #tpu.memory_space<vmem>>, vector<22x128xbf16>
    %c3_114 = arith.constant 3 : index
    %c0_115 = arith.constant 0 : index
    %c0_116 = arith.constant 0 : index
    %117 = vector.load %arg7[%c3_114, %c0_115, %c0_116] : memref<6x128x128xbf16, #tpu.memory_space<vmem>>, vector<1x128x128xbf16>
    %118 = vector.shape_cast %117 : vector<1x128x128xbf16> to vector<128x128xbf16>
    %cst_117 = arith.constant dense<0.000000e+00> : vector<22x128xf32>
    %119 = tpu.matmul %116, %118, %cst_117 {dimension_numbers = #tpu.dot_dimension_numbers<[1], [0], [0], [1], [0, 0, 1, 1], [], []>} : vector<22x128xbf16>, vector<128x128xbf16>, vector<22x128xf32> -> vector<22x128xf32>
    %120 = arith.addf %115, %119 : vector<22x128xf32>
    %c13 = arith.constant 13 : index
    %c0_118 = arith.constant 0 : index
    %121 = vector.load %arg13[%c13, %c0_118] : memref<36x128xbf16, #tpu.memory_space<vmem>>, vector<22x128xbf16>
    %c4_119 = arith.constant 4 : index
    %c0_120 = arith.constant 0 : index
    %c0_121 = arith.constant 0 : index
    %122 = vector.load %arg7[%c4_119, %c0_120, %c0_121] : memref<6x128x128xbf16, #tpu.memory_space<vmem>>, vector<1x128x128xbf16>
    %123 = vector.shape_cast %122 : vector<1x128x128xbf16> to vector<128x128xbf16>
    %cst_122 = arith.constant dense<0.000000e+00> : vector<22x128xf32>
    %124 = tpu.matmul %121, %123, %cst_122 {dimension_numbers = #tpu.dot_dimension_numbers<[1], [0], [0], [1], [0, 0, 1, 1], [], []>} : vector<22x128xbf16>, vector<128x128xbf16>, vector<22x128xf32> -> vector<22x128xf32>
    %125 = arith.addf %120, %124 : vector<22x128xf32>
    %c14 = arith.constant 14 : index
    %c0_123 = arith.constant 0 : index
    %126 = vector.load %arg13[%c14, %c0_123] : memref<36x128xbf16, #tpu.memory_space<vmem>>, vector<22x128xbf16>
    %c5_124 = arith.constant 5 : index
    %c0_125 = arith.constant 0 : index
    %c0_126 = arith.constant 0 : index
    %127 = vector.load %arg7[%c5_124, %c0_125, %c0_126] : memref<6x128x128xbf16, #tpu.memory_space<vmem>>, vector<1x128x128xbf16>
    %128 = vector.shape_cast %127 : vector<1x128x128xbf16> to vector<128x128xbf16>
    %cst_127 = arith.constant dense<0.000000e+00> : vector<22x128xf32>
    %129 = tpu.matmul %126, %128, %cst_127 {dimension_numbers = #tpu.dot_dimension_numbers<[1], [0], [0], [1], [0, 0, 1, 1], [], []>} : vector<22x128xbf16>, vector<128x128xbf16>, vector<22x128xf32> -> vector<22x128xf32>
    %130 = arith.addf %125, %129 : vector<22x128xf32>
    %131 = vector.broadcast %3 : vector<1x128xf32> to vector<22x128xf32>
    %132 = arith.addf %111, %131 : vector<22x128xf32>
    %cst_128 = arith.constant 0.000000e+00 : f32
    %133 = vector.broadcast %cst_128 : f32 to vector<22x128xf32>
    %134 = arith.maximumf %132, %133 : vector<22x128xf32>
    %135 = vector.broadcast %0 : vector<22x1xf32> to vector<22x128xf32>
    %136 = arith.mulf %134, %135 : vector<22x128xf32>
    %137 = arith.truncf %136 : vector<22x128xf32> to vector<22x128xbf16>
    %c0_129 = arith.constant 0 : index
    %c7_130 = arith.constant 7 : index
    %c0_131 = arith.constant 0 : index
    %138 = vector.load %arg14[%c0_129, %c7_130, %c0_131] : memref<2x36x128xbf16, #tpu.memory_space<vmem>>, vector<1x22x128xbf16>
    %139 = vector.shape_cast %138 : vector<1x22x128xbf16> to vector<22x128xbf16>
    %140 = vector.shape_cast %137 : vector<22x128xbf16> to vector<1x22x128xbf16>
    tpu.vector_store %arg14[%c0_129, %c7_130, %c0_131], %140 {strides = array<i32>} : memref<2x36x128xbf16, #tpu.memory_space<vmem>>, vector<1x22x128xbf16>,
    %141 = vector.broadcast %3 : vector<1x128xf32> to vector<22x128xf32>
    %142 = arith.addf %130, %141 : vector<22x128xf32>
    %cst_132 = arith.constant 0.000000e+00 : f32
    %143 = vector.broadcast %cst_132 : f32 to vector<22x128xf32>
    %144 = arith.maximumf %142, %143 : vector<22x128xf32>
    %145 = vector.broadcast %0 : vector<22x1xf32> to vector<22x128xf32>
    %146 = arith.mulf %144, %145 : vector<22x128xf32>
    %147 = arith.truncf %146 : vector<22x128xf32> to vector<22x128xbf16>
    %c1_133 = arith.constant 1 : index
    %c7_134 = arith.constant 7 : index
    %c0_135 = arith.constant 0 : index
    %148 = vector.load %arg14[%c1_133, %c7_134, %c0_135] : memref<2x36x128xbf16, #tpu.memory_space<vmem>>, vector<1x22x128xbf16>
    %149 = vector.shape_cast %148 : vector<1x22x128xbf16> to vector<22x128xbf16>
    %150 = vector.shape_cast %147 : vector<22x128xbf16> to vector<1x22x128xbf16>
    tpu.vector_store %arg14[%c1_133, %c7_134, %c0_135], %150 {strides = array<i32>} : memref<2x36x128xbf16, #tpu.memory_space<vmem>>, vector<1x22x128xbf16>,
    %c0_136 = arith.constant 0 : index
    %c7_137 = arith.constant 7 : index
    %c0_138 = arith.constant 0 : index
    %151 = vector.load %arg14[%c0_136, %c7_137, %c0_138] : memref<2x36x128xbf16, #tpu.memory_space<vmem>>, vector<1x22x128xbf16>
    %152 = vector.shape_cast %151 : vector<1x22x128xbf16> to vector<22x128xbf16>
    %c0_139 = arith.constant 0 : index
    %c0_140 = arith.constant 0 : index
    %c0_141 = arith.constant 0 : index
    %153 = vector.load %arg9[%c0_139, %c0_140, %c0_141] : memref<6x128x128xbf16, #tpu.memory_space<vmem>>, vector<1x128x128xbf16>
    %154 = vector.shape_cast %153 : vector<1x128x128xbf16> to vector<128x128xbf16>
    %cst_142 = arith.constant dense<0.000000e+00> : vector<22x128xf32>
    %155 = tpu.matmul %152, %154, %cst_142 {dimension_numbers = #tpu.dot_dimension_numbers<[1], [0], [0], [1], [0, 0, 1, 1], [], []>} : vector<22x128xbf16>, vector<128x128xbf16>, vector<22x128xf32> -> vector<22x128xf32>
    %c0_143 = arith.constant 0 : index
    %c8_144 = arith.constant 8 : index
    %c0_145 = arith.constant 0 : index
    %156 = vector.load %arg14[%c0_143, %c8_144, %c0_145] : memref<2x36x128xbf16, #tpu.memory_space<vmem>>, vector<1x22x128xbf16>
    %157 = vector.shape_cast %156 : vector<1x22x128xbf16> to vector<22x128xbf16>
    %c1_146 = arith.constant 1 : index
    %c0_147 = arith.constant 0 : index
    %c0_148 = arith.constant 0 : index
    %158 = vector.load %arg9[%c1_146, %c0_147, %c0_148] : memref<6x128x128xbf16, #tpu.memory_space<vmem>>, vector<1x128x128xbf16>
    %159 = vector.shape_cast %158 : vector<1x128x128xbf16> to vector<128x128xbf16>
    %cst_149 = arith.constant dense<0.000000e+00> : vector<22x128xf32>
    %160 = tpu.matmul %157, %159, %cst_149 {dimension_numbers = #tpu.dot_dimension_numbers<[1], [0], [0], [1], [0, 0, 1, 1], [], []>} : vector<22x128xbf16>, vector<128x128xbf16>, vector<22x128xf32> -> vector<22x128xf32>
    %161 = arith.addf %155, %160 : vector<22x128xf32>
    %c0_150 = arith.constant 0 : index
    %c13_151 = arith.constant 13 : index
    %c0_152 = arith.constant 0 : index
    %162 = vector.load %arg14[%c0_150, %c13_151, %c0_152] : memref<2x36x128xbf16, #tpu.memory_space<vmem>>, vector<1x22x128xbf16>
    %163 = vector.shape_cast %162 : vector<1x22x128xbf16> to vector<22x128xbf16>
    %c2_153 = arith.constant 2 : index
    %c0_154 = arith.constant 0 : index
    %c0_155 = arith.constant 0 : index
    %164 = vector.load %arg9[%c2_153, %c0_154, %c0_155] : memref<6x128x128xbf16, #tpu.memory_space<vmem>>, vector<1x128x128xbf16>
    %165 = vector.shape_cast %164 : vector<1x128x128xbf16> to vector<128x128xbf16>
    %cst_156 = arith.constant dense<0.000000e+00> : vector<22x128xf32>
    %166 = tpu.matmul %163, %165, %cst_156 {dimension_numbers = #tpu.dot_dimension_numbers<[1], [0], [0], [1], [0, 0, 1, 1], [], []>} : vector<22x128xbf16>, vector<128x128xbf16>, vector<22x128xf32> -> vector<22x128xf32>
    %167 = arith.addf %161, %166 : vector<22x128xf32>
    %c0_157 = arith.constant 0 : index
    %c14_158 = arith.constant 14 : index
    %c0_159 = arith.constant 0 : index
    %168 = vector.load %arg14[%c0_157, %c14_158, %c0_159] : memref<2x36x128xbf16, #tpu.memory_space<vmem>>, vector<1x22x128xbf16>
    %169 = vector.shape_cast %168 : vector<1x22x128xbf16> to vector<22x128xbf16>
    %c3_160 = arith.constant 3 : index
    %c0_161 = arith.constant 0 : index
    %c0_162 = arith.constant 0 : index
    %170 = vector.load %arg9[%c3_160, %c0_161, %c0_162] : memref<6x128x128xbf16, #tpu.memory_space<vmem>>, vector<1x128x128xbf16>
    %171 = vector.shape_cast %170 : vector<1x128x128xbf16> to vector<128x128xbf16>
    %cst_163 = arith.constant dense<0.000000e+00> : vector<22x128xf32>
    %172 = tpu.matmul %169, %171, %cst_163 {dimension_numbers = #tpu.dot_dimension_numbers<[1], [0], [0], [1], [0, 0, 1, 1], [], []>} : vector<22x128xbf16>, vector<128x128xbf16>, vector<22x128xf32> -> vector<22x128xf32>
    %173 = arith.addf %167, %172 : vector<22x128xf32>
    %c1_164 = arith.constant 1 : index
    %c7_165 = arith.constant 7 : index
    %c0_166 = arith.constant 0 : index
    %174 = vector.load %arg14[%c1_164, %c7_165, %c0_166] : memref<2x36x128xbf16, #tpu.memory_space<vmem>>, vector<1x22x128xbf16>
    %175 = vector.shape_cast %174 : vector<1x22x128xbf16> to vector<22x128xbf16>
    %c4_167 = arith.constant 4 : index
    %c0_168 = arith.constant 0 : index
    %c0_169 = arith.constant 0 : index
    %176 = vector.load %arg9[%c4_167, %c0_168, %c0_169] : memref<6x128x128xbf16, #tpu.memory_space<vmem>>, vector<1x128x128xbf16>
    %177 = vector.shape_cast %176 : vector<1x128x128xbf16> to vector<128x128xbf16>
    %cst_170 = arith.constant dense<0.000000e+00> : vector<22x128xf32>
    %178 = tpu.matmul %175, %177, %cst_170 {dimension_numbers = #tpu.dot_dimension_numbers<[1], [0], [0], [1], [0, 0, 1, 1], [], []>} : vector<22x128xbf16>, vector<128x128xbf16>, vector<22x128xf32> -> vector<22x128xf32>
    %179 = arith.addf %173, %178 : vector<22x128xf32>
    %c1_171 = arith.constant 1 : index
    %c8_172 = arith.constant 8 : index
    %c0_173 = arith.constant 0 : index
    %180 = vector.load %arg14[%c1_171, %c8_172, %c0_173] : memref<2x36x128xbf16, #tpu.memory_space<vmem>>, vector<1x22x128xbf16>
    %181 = vector.shape_cast %180 : vector<1x22x128xbf16> to vector<22x128xbf16>
    %c5_174 = arith.constant 5 : index
    %c0_175 = arith.constant 0 : index
    %c0_176 = arith.constant 0 : index
    %182 = vector.load %arg9[%c5_174, %c0_175, %c0_176] : memref<6x128x128xbf16, #tpu.memory_space<vmem>>, vector<1x128x128xbf16>
    %183 = vector.shape_cast %182 : vector<1x128x128xbf16> to vector<128x128xbf16>
    %cst_177 = arith.constant dense<0.000000e+00> : vector<22x128xf32>
    %184 = tpu.matmul %181, %183, %cst_177 {dimension_numbers = #tpu.dot_dimension_numbers<[1], [0], [0], [1], [0, 0, 1, 1], [], []>} : vector<22x128xbf16>, vector<128x128xbf16>, vector<22x128xf32> -> vector<22x128xf32>
    %185 = arith.addf %179, %184 : vector<22x128xf32>
    %186 = vector.broadcast %4 : vector<1x128xf32> to vector<22x128xf32>
    %187 = arith.addf %185, %186 : vector<22x128xf32>
    %188 = arith.negf %187 : vector<22x128xf32>
    %189 = math.exp %188 : vector<22x128xf32>
    %cst_178 = arith.constant 1.000000e+00 : f32
    %190 = vector.broadcast %cst_178 : f32 to vector<22x128xf32>
    %191 = arith.addf %190, %189 : vector<22x128xf32>
    %192 = arith.divf %190, %191 : vector<22x128xf32>
    %193 = arith.truncf %192 : vector<22x128xf32> to vector<22x128xbf16>
    %c0_179 = arith.constant 0 : index
    %c7_180 = arith.constant 7 : index
    %c0_181 = arith.constant 0 : index
    %194 = vector.load %arg11[%c0_179, %c7_180, %c0_181] : memref<1x36x128xbf16, #tpu.memory_space<vmem>>, vector<1x22x128xbf16>
    %195 = vector.shape_cast %194 : vector<1x22x128xbf16> to vector<22x128xbf16>
    %196 = vector.shape_cast %193 : vector<22x128xbf16> to vector<1x22x128xbf16>
    tpu.vector_store %arg11[%c0_179, %c7_180, %c0_181], %196 {strides = array<i32>} : memref<1x36x128xbf16, #tpu.memory_space<vmem>>, vector<1x22x128xbf16>,
    return
  }
  func.func @transform_0(%arg0: i32) -> (i32, i32, i32, i32) {
    %c0_i32 = arith.constant 0 : i32
    %c0_i32_0 = arith.constant 0 : i32
    %c0_i32_1 = arith.constant 0 : i32
    %c0_i32_2 = arith.constant 0 : i32
    return %arg0, %c0_i32, %c0_i32_0, %c0_i32_1 : i32, i32, i32, i32
  }
  func.func @transform_1(%arg0: i32) -> (i32, i32) {
    %c0_i32 = arith.constant 0 : i32
    %c0_i32_0 = arith.constant 0 : i32
    %c0_i32_1 = arith.constant 0 : i32
    return %c0_i32, %c0_i32_0 : i32, i32
  }
  func.func @transform_2(%arg0: i32) -> (i32, i32) {
    %c0_i32 = arith.constant 0 : i32
    %c0_i32_0 = arith.constant 0 : i32
    %c0_i32_1 = arith.constant 0 : i32
    return %c0_i32, %c0_i32_0 : i32, i32
  }
  func.func @transform_3(%arg0: i32) -> (i32, i32) {
    %c0_i32 = arith.constant 0 : i32
    %c0_i32_0 = arith.constant 0 : i32
    %c0_i32_1 = arith.constant 0 : i32
    return %c0_i32, %c0_i32_0 : i32, i32
  }
  func.func @transform_4(%arg0: i32) -> (i32, i32, i32) {
    %c0_i32 = arith.constant 0 : i32
    %c0_i32_0 = arith.constant 0 : i32
    %c0_i32_1 = arith.constant 0 : i32
    %c0_i32_2 = arith.constant 0 : i32
    return %c0_i32, %c0_i32_0, %c0_i32_1 : i32, i32, i32
  }
  func.func @transform_5(%arg0: i32) -> (i32, i32) {
    %c0_i32 = arith.constant 0 : i32
    %c0_i32_0 = arith.constant 0 : i32
    %c0_i32_1 = arith.constant 0 : i32
    return %c0_i32, %c0_i32_0 : i32, i32
  }
  func.func @transform_6(%arg0: i32) -> (i32, i32, i32) {
    %c0_i32 = arith.constant 0 : i32
    %c0_i32_0 = arith.constant 0 : i32
    %c0_i32_1 = arith.constant 0 : i32
    %c0_i32_2 = arith.constant 0 : i32
    return %c0_i32, %c0_i32_0, %c0_i32_1 : i32, i32, i32
  }
  func.func @transform_7(%arg0: i32) -> (i32, i32) {
    %c0_i32 = arith.constant 0 : i32
    %c0_i32_0 = arith.constant 0 : i32
    %c0_i32_1 = arith.constant 0 : i32
    return %c0_i32, %c0_i32_0 : i32, i32
  }
  func.func @transform_8(%arg0: i32) -> (i32, i32, i32) {
    %c0_i32 = arith.constant 0 : i32
    %c0_i32_0 = arith.constant 0 : i32
    %c0_i32_1 = arith.constant 0 : i32
    %c0_i32_2 = arith.constant 0 : i32
    return %c0_i32, %c0_i32_0, %c0_i32_1 : i32, i32, i32
  }
  func.func @transform_9(%arg0: i32) -> (i32, i32) {
    %c0_i32 = arith.constant 0 : i32
    %c0_i32_0 = arith.constant 0 : i32
    %c0_i32_1 = arith.constant 0 : i32
    return %c0_i32, %c0_i32_0 : i32, i32
  }
  func.func @transform_10(%arg0: i32) -> (i32, i32, i32) {
    %c0_i32 = arith.constant 0 : i32
    %c0_i32_0 = arith.constant 0 : i32
    %c0_i32_1 = arith.constant 0 : i32
    return %arg0, %c0_i32, %c0_i32_0 : i32, i32, i32
  }
}

</mosaic_0001>

<bundles_post_ra>
// kernel: autoencoder_forward.1
= control target key start
LH: loop header
LB: loop body
LE: loop exit
PB: predicated region body
PF: predicated region fallthrough
CT: control target
= control target key end

     0   :  { %s5941_s0 = inlined_call_operand.hbm [shape: bf16[2,2,36,64], index: 0, kind: input, shape index: {}]   ;;  %s5942_s1 = inlined_call_operand.hbm [shape: f32[36,1], index: 1, kind: input, shape index: {}]   ;;  %s5943_s2 = inlined_call_operand.hbm [shape: bf16[64,128], index: 2, kind: input, shape index: {}]   ;;  %s5944_s3 = inlined_call_operand.hbm [shape: f32[1,128], index: 3, kind: input, shape index: {}]   ;;  %s5945_s4 = inlined_call_operand.hbm [shape: bf16[6,128,128], index: 4, kind: input, shape index: {}]   ;;  %s5946_s5 = inlined_call_operand.hbm [shape: f32[1,128], index: 5, kind: input, shape index: {}]   ;;  %s5947_s6 = inlined_call_operand.hbm [shape: bf16[6,128,128], index: 6, kind: input, shape index: {}]   ;;  %s5948_s7 = inlined_call_operand.hbm [shape: f32[1,128], index: 7, kind: input, shape index: {}]   ;;  %s5949_s8 = inlined_call_operand.hbm [shape: bf16[6,128,128], index: 8, kind: input, shape index: {}]   ;;  %s5950_s9 = inlined_call_operand.hbm [shape: f32[1,128], index: 9, kind: input, shape index: {}]   ;;  %s5951_s10 = inlined_call_operand.hbm [shape: bf16[2,36,128], index: 10, kind: output, shape index: {}]  }
   0x1   :  { %5959 = sst [smem:[#allocation31_spill]] %s5942_s1 }
   0x2   :  { %5960 = sst [smem:[#allocation32_spill]] %s5944_s3 }
   0x3   :  { %5961 = sst [smem:[#allocation33_spill]] %s5951_s10 }
   0x4   :  { %15 = vsyncpa [#allocation6], 0 }
   0x5   :  { %17 = vsyncpa [#allocation6 + $0x1], 0 }
   0x6   :  { %18 = vsyncpa [#allocation9], 0 }
   0x7   :  { %19 = vsyncpa [#allocation12], 0 }
   0x8   :  { %20 = vsyncpa [#allocation15], 0 }
   0x9   :  { %21 = vsyncpa [#allocation18], 0 }
   0xa   :  { %22 = vsyncpa [#allocation21], 0 }
   0xb   :  { %23 = vsyncpa [#allocation7], 0 }
   0xc   :  { %25 = vsyncpa [#allocation7 + $0x1], 0  ;;  %s5337_s13 = smov 0   ;;  %s5339_s14 = smov 0  }
   0xd   :  { %s5341_s15 = smov 0   ;;  %s5343_s16 = smov 0  }
   0xe LB: > { %s5264_s17 = smov [#allocation8]   ;;  %s5358_s19 = sadd.s32 4294967295, %s5262_s16   ;;  %s5262_s16 = sphi %s5343_s16, %s6004_s16   ;;  %s5258_s15 = sphi %s5341_s15, %s6003_s15   ;;  %s5254_s14 = sphi %s5339_s14, %s6002_s14   ;;  %s5250_s13 = sphi %s5337_s13, %s6001_s13  }
   0xf   : > { %s289_s18 = sshll.u32 %s5264_s17, 4  ;;  %p3721_p0 = scmp.ge.s32.totalorder %s5262_s16, 1  ;;  %s5363_s18 = int_to_ptr.vmem [resolvable:$true] %s289_s18 }
  0x10   : > { %p5954_p1 = scmp.eq.s32.totalorder %s5358_s19, 0  ;;  %p277_p2 = scmp.lt.s32.totalorder %s5262_s16, 3 }
  0x11   : > { %s5265_s21 = smov [#allocation11]   ;;  %s5266_s24 = smov [#allocation14]  }
  0x12   : > { %p5365_p3 = pnand %p3721_p0, %p277_p2  ;;  %s316_s22 = sshll.u32 %s5265_s21, 4  ;;  %s5378_s22 = int_to_ptr.vmem [resolvable:$true] %s316_s22 }
  0x13   : > { %s340_s25 = sshll.u32 %s5266_s24, 4  ;;  %s5965_s1 = sld [smem:[#allocation31_spill]]  ;;  %s5380_s25 = int_to_ptr.vmem [resolvable:$true] %s340_s25 }
  0x14   : > { %s5962_s20 = scalar_select %p5365_p3, 1, 0 }
  0x15   : > { %p4597_p5 = pneg %p5365_p3 }
  0x16   : > { %5963 = sst [smem:[#allocation30_spill]] %s5962_s20 }
  0x17   : > { %p5374_p6 = pnand %p4597_p5, %p5954_p1 }
  0x19   : > { %s4894_s28 = scalar_lea.hbm %s5965_s1, 640  ;;  %p5390_p8 = pneg %p5374_p6 }
  0x1a   : > { %p4895_p7 = scmp.ne.s32.totalorder %s5965_s1, %s4894_s28  ;;  %p4901_p11 = scmp.lt.u32.totalorder %s4894_s28, %s5965_s1 }
  0x1c   : > { %p4897_p9 = pnand %p5390_p8, %p4895_p7 }
  0x1e   : > { %p4898_p10 = pneg %p4897_p9 }
  0x20   : > { %p4903_p12 = pnand %p4901_p11, %p4898_p10 }
  0x22   : > { %4906 = shalt.err (!%p4903_p12)
}
  0x23   : > { %s4907_s21 = scalar_lea.vmem %s5363_s18, 640  ;;  %p4915_p5 = scmp.lt.s32.totalorder %s5363_s18, %s5363_s18 }
  0x24   : > { %p4908_p13 = scmp.ne.s32.totalorder %s5363_s18, %s4907_s21  ;;  %p4916_p4 = scmp.lt.s32.totalorder %s4907_s21, %s4907_s21 }
  0x26   : > { %p4910_p0 = pnand %p4908_p13, %p5390_p8  ;;  %p4917_p7 = por %p4916_p4, %p4915_p5 }
  0x28   : > { %p4911_p2 = pneg %p4910_p0 }
  0x2a   : > { %p4918_p9 = pnand %p4917_p7, %p4911_p2 }
  0x2c   : > { %4921 = shalt.err (!%p4918_p9)
}
  0x2d   : > { %s5267_s24 = smov 128   ;;  %s5268_s26 = smov 8  }
  0x2e   : > { %4600 = dma.hbm_to_vmem [thread:$0]  (!%p5374_p6), %s5965_s1, 640, %s5363_s18, [#allocation9], %s5267_s24, %s5267_s24, %s5268_s26  }
  0x2f   : > { %s5967_s3 = sld [smem:[#allocation32_spill]] }
  0x35   : > { %s4922_s12 = scalar_lea.hbm %s5967_s3, 16 }
  0x36   : > { %p4923_p4 = scmp.ne.s32.totalorder %s5967_s3, %s4922_s12  ;;  %p4929_p12 = scmp.lt.u32.totalorder %s4922_s12, %s5967_s3 }
  0x38   : > { %p4925_p10 = pnand %p4923_p4, %p5390_p8 }
  0x3a   : > { %p4926_p11 = pneg %p4925_p10 }
  0x3c   : > { %p4931_p13 = pnand %p4929_p12, %p4926_p11 }
  0x3e   : > { %4934 = shalt.err (!%p4931_p13)
}
  0x3f   : > { %s4935_s18 = scalar_lea.vmem %s5378_s22, 16  ;;  %s4942_s10 = scalar_lea.vmem %s5378_s22, 32 }
  0x40   : > { %p4936_p0 = scmp.ne.s32.totalorder %s5378_s22, %s4935_s18  ;;  %p4943_p7 = scmp.lt.s32.totalorder %s5378_s22, %s5378_s22 }
  0x41   : > { %p4944_p9 = scmp.lt.s32.totalorder %s4942_s10, %s4935_s18 }
  0x42   : > { %p4938_p2 = pnand %p4936_p0, %p5390_p8 }
  0x43   : > { %p4945_p4 = por %p4944_p9, %p4943_p7 }
  0x44   : > { %p4939_p5 = pneg %p4938_p2 }
  0x46   : > { %p4946_p10 = pnand %p4945_p4, %p4939_p5 }
  0x48   : > { %4949 = shalt.err (!%p4946_p10)
}
  0x49   : > { %4606 = dma.hbm_to_vmem [thread:$0]  (!%p5374_p6), %s5967_s3, 16, %s5378_s22, [#allocation12]  }
  0x4a   : > { %s4950_s28 = scalar_lea.hbm %s5946_s5, 16 }
  0x4b   : > { %p4951_p11 = scmp.ne.s32.totalorder %s5946_s5, %s4950_s28  ;;  %p4957_p0 = scmp.lt.u32.totalorder %s4950_s28, %s5946_s5 }
  0x4d   : > { %p4953_p12 = pnand %p4951_p11, %p5390_p8 }
  0x4f   : > { %p4954_p13 = pneg %p4953_p12 }
  0x51   : > { %p4959_p2 = pnand %p4957_p0, %p4954_p13 }
  0x53   : > { %4962 = shalt.err (!%p4959_p2)
}
  0x54   : > { %s4963_s22 = scalar_lea.vmem %s5380_s25, 16  ;;  %s4970_s21 = scalar_lea.vmem %s5380_s25, 32 }
  0x55   : > { %p4964_p5 = scmp.ne.s32.totalorder %s5380_s25, %s4963_s22  ;;  %p4971_p4 = scmp.lt.s32.totalorder %s5380_s25, %s5380_s25 }
  0x56   : > { %p4972_p10 = scmp.lt.s32.totalorder %s4970_s21, %s4963_s22 }
  0x57   : > { %p4966_p7 = pnand %p4964_p5, %p5390_p8 }
  0x58   : > { %p4973_p11 = por %p4972_p10, %p4971_p4 }
  0x59   : > { %p4967_p9 = pneg %p4966_p7 }
  0x5b   : > { %p4974_p12 = pnand %p4973_p11, %p4967_p9 }
  0x5d   : > { %4977 = shalt.err (!%p4974_p12)
}
  0x5e   : > { %4612 = dma.hbm_to_vmem [thread:$0]  (!%p5374_p6), %s5946_s5, 16, %s5380_s25, [#allocation15]  }
  0x5f   : > { %s5269_s20 = smov [#allocation17]   ;;  %s5270_s26 = smov [#allocation10]  }
  0x60   : > { %s364_s24 = sshll.u32 %s5269_s20, 4  ;;  %s302_s27 = sshll.u32 %s5270_s26, 4  ;;  %s365_s24 = int_to_ptr.vmem [resolvable:$true] %s364_s24  ;;  %s303_s27 = int_to_ptr.vmem [resolvable:$true] %s302_s27 }
  0x61   : > { %s4978_s30 = scalar_lea.hbm %s5948_s7, 16 }
  0x62   : > { %p4979_p13 = scmp.ne.s32.totalorder %s5948_s7, %s4978_s30  ;;  %p4985_p5 = scmp.lt.u32.totalorder %s4978_s30, %s5948_s7 }
  0x64   : > { %p4981_p0 = pnand %p4979_p13, %p5390_p8 }
  0x66   : > { %p4982_p2 = pneg %p4981_p0 }
  0x68   : > { %p4987_p7 = pnand %p4985_p5, %p4982_p2 }
  0x6a   : > { %4990 = shalt.err (!%p4987_p7)
}
  0x6b   : > { %s4991_s25 = scalar_lea.vmem %s365_s24, 16  ;;  %s4998_s18 = scalar_lea.vmem %s365_s24, 32 }
  0x6c   : > { %p4992_p9 = scmp.ne.s32.totalorder %s365_s24, %s4991_s25  ;;  %p4999_p11 = scmp.lt.s32.totalorder %s365_s24, %s365_s24 }
  0x6d   : > { %p5000_p12 = scmp.lt.s32.totalorder %s4998_s18, %s4991_s25 }
  0x6e   : > { %p4994_p4 = pnand %p4992_p9, %p5390_p8 }
  0x6f   : > { %p5001_p1 = por %p5000_p12, %p4999_p11 }
  0x70   : > { %p4995_p10 = pneg %p4994_p4 }
  0x72   : > { %p5002_p3 = pnand %p5001_p1, %p4995_p10 }
  0x74   : > { %5005 = shalt.err (!%p5002_p3)
}
  0x75   : > { %4618 = dma.hbm_to_vmem [thread:$0]  (!%p5374_p6), %s5948_s7, 16, %s365_s24, [#allocation18]  }
  0x76   : > { %s5006_s29 = scalar_lea.hbm %s5943_s2, 512 }
  0x77   : > { %p5007_p13 = scmp.ne.s32.totalorder %s5943_s2, %s5006_s29  ;;  %p5013_p3 = scmp.lt.u32.totalorder %s5006_s29, %s5943_s2 }
  0x79   : > { %p5009_p0 = pnand %p5007_p13, %p5390_p8 }
  0x7b   : > { %p5010_p1 = pneg %p5009_p0 }
  0x7d   : > { %p5015_p2 = pnand %p5013_p3, %p5010_p1 }
  0x7f   : > { %5018 = shalt.err (!%p5015_p2)
}
  0x80   : > { %s5019_s21 = scalar_lea.vmem %s303_s27, 512  ;;  %p5027_p4 = scmp.lt.s32.totalorder %s303_s27, %s303_s27 }
  0x81   : > { %p5020_p5 = scmp.ne.s32.totalorder %s303_s27, %s5019_s21  ;;  %p5028_p10 = scmp.lt.s32.totalorder %s5019_s21, %s5019_s21 }
  0x83   : > { %p5022_p7 = pnand %p5020_p5, %p5390_p8  ;;  %p5029_p11 = por %p5028_p10, %p5027_p4 }
  0x85   : > { %p5023_p9 = pneg %p5022_p7 }
  0x87   : > { %p5030_p12 = pnand %p5029_p11, %p5023_p9 }
  0x89   : > { %5033 = shalt.err (!%p5030_p12)
}
  0x8a   : > { %s5956_s24 = smov 64   ;;  %s5957_s25 = smov 4  }
  0x8b   : > { %4603 = dma.hbm_to_vmem [thread:$0]  (!%p5374_p6), %s5943_s2, 512, %s303_s27, [#allocation9], %s5956_s24, %s5956_s24, %s5957_s25  }
  0x8c   : > { %s5273_s20 = smov [#allocation13]   ;;  %s5274_s28 = smov [#allocation16]  }
  0x8d   : > { %s326_s26 = sshll.u32 %s5273_s20, 4  ;;  %s350_s29 = sshll.u32 %s5274_s28, 4  ;;  %s327_s26 = int_to_ptr.vmem [resolvable:$true] %s326_s26  ;;  %s351_s29 = int_to_ptr.vmem [resolvable:$true] %s350_s29 }
  0x8e   : > { %s5034_s17 = scalar_lea.hbm %s5945_s4, 6144 }
  0x8f   : > { %p5035_p13 = scmp.ne.s32.totalorder %s5945_s4, %s5034_s17  ;;  %p5041_p3 = scmp.lt.u32.totalorder %s5034_s17, %s5945_s4 }
  0x91   : > { %p5037_p0 = pnand %p5035_p13, %p5390_p8 }
  0x93   : > { %p5038_p1 = pneg %p5037_p0 }
  0x95   : > { %p5043_p2 = pnand %p5041_p3, %p5038_p1 }
  0x97   : > { %5046 = shalt.err (!%p5043_p2)
}
  0x98   : > { %s5047_s27 = scalar_lea.vmem %s327_s26, 6144  ;;  %p5055_p4 = scmp.lt.s32.totalorder %s327_s26, %s327_s26 }
  0x99   : > { %p5048_p5 = scmp.ne.s32.totalorder %s327_s26, %s5047_s27  ;;  %p5056_p10 = scmp.lt.s32.totalorder %s5047_s27, %s5047_s27 }
  0x9b   : > { %p5050_p7 = pnand %p5048_p5, %p5390_p8  ;;  %p5057_p11 = por %p5056_p10, %p5055_p4 }
  0x9d   : > { %p5051_p9 = pneg %p5050_p7 }
  0x9f   : > { %p5058_p12 = pnand %p5057_p11, %p5051_p9 }
  0xa1   : > { %5061 = shalt.err (!%p5058_p12)
}
  0xa2   : > { %4609 = dma.hbm_to_vmem [thread:$0]  (!%p5374_p6), %s5945_s4, 6144, %s327_s26, [#allocation12], %s5956_s24, %s5956_s24, %s5957_s25  }
  0xa3   : > { %s5062_s20 = scalar_lea.hbm %s5947_s6, 6144 }
  0xa4   : > { %p5063_p13 = scmp.ne.s32.totalorder %s5947_s6, %s5062_s20  ;;  %p5069_p3 = scmp.lt.u32.totalorder %s5062_s20, %s5947_s6 }
  0xa6   : > { %p5065_p0 = pnand %p5063_p13, %p5390_p8 }
  0xa8   : > { %p5066_p1 = pneg %p5065_p0 }
  0xaa   : > { %p5071_p2 = pnand %p5069_p3, %p5066_p1 }
  0xac   : > { %5074 = shalt.err (!%p5071_p2)
}
  0xad   : > { %s5075_s22 = scalar_lea.vmem %s351_s29, 6144  ;;  %p5083_p4 = scmp.lt.s32.totalorder %s351_s29, %s351_s29 }
  0xae   : > { %p5076_p5 = scmp.ne.s32.totalorder %s351_s29, %s5075_s22  ;;  %p5084_p10 = scmp.lt.s32.totalorder %s5075_s22, %s5075_s22 }
  0xb0   : > { %p5078_p7 = pnand %p5076_p5, %p5390_p8  ;;  %p5085_p11 = por %p5084_p10, %p5083_p4 }
  0xb2   : > { %p5079_p9 = pneg %p5078_p7 }
  0xb4   : > { %p5086_p12 = pnand %p5085_p11, %p5079_p9 }
  0xb6   : > { %5089 = shalt.err (!%p5086_p12)
}
  0xb7   : > { %4615 = dma.hbm_to_vmem [thread:$0]  (!%p5374_p6), %s5947_s6, 6144, %s351_s29, [#allocation15], %s5956_s24, %s5956_s24, %s5957_s25  }
  0xb8   : > { %s5275_s27 = smov [#allocation19]   ;;  %s5276_s3 = smov [#allocation20]  }
  0xb9   : > { %s374_s1 = sshll.u32 %s5275_s27, 4  ;;  %s388_s18 = sshll.u32 %s5276_s3, 4  ;;  %s375_s1 = int_to_ptr.vmem [resolvable:$true] %s374_s1  ;;  %s389_s18 = int_to_ptr.vmem [resolvable:$true] %s388_s18 }
  0xba   : > { %s5090_s28 = scalar_lea.hbm %s5949_s8, 6144 }
  0xbb   : > { %p5091_p13 = scmp.ne.s32.totalorder %s5949_s8, %s5090_s28  ;;  %p5097_p3 = scmp.lt.u32.totalorder %s5090_s28, %s5949_s8 }
  0xbd   : > { %p5093_p0 = pnand %p5091_p13, %p5390_p8 }
  0xbf   : > { %p5094_p1 = pneg %p5093_p0 }
  0xc1   : > { %p5099_p2 = pnand %p5097_p3, %p5094_p1 }
  0xc3   : > { %5102 = shalt.err (!%p5099_p2)
}
  0xc4   : > { %s5103_s29 = scalar_lea.vmem %s375_s1, 6144  ;;  %p5111_p4 = scmp.lt.s32.totalorder %s375_s1, %s375_s1 }
  0xc5   : > { %p5104_p5 = scmp.ne.s32.totalorder %s375_s1, %s5103_s29  ;;  %p5112_p10 = scmp.lt.s32.totalorder %s5103_s29, %s5103_s29 }
  0xc7   : > { %p5106_p7 = pnand %p5104_p5, %p5390_p8  ;;  %p5113_p11 = por %p5112_p10, %p5111_p4 }
  0xc9   : > { %p5107_p9 = pneg %p5106_p7 }
  0xcb   : > { %p5114_p12 = pnand %p5113_p11, %p5107_p9 }
  0xcd   : > { %5117 = shalt.err (!%p5114_p12)
}
  0xce   : > { %4621 = dma.hbm_to_vmem [thread:$0]  (!%p5374_p6), %s5949_s8, 6144, %s375_s1, [#allocation18], %s5956_s24, %s5956_s24, %s5957_s25  }
  0xcf   : > { %s5118_s10 = scalar_lea.hbm %s5950_s9, 16 }
  0xd0   : > { %p5119_p13 = scmp.ne.s32.totalorder %s5950_s9, %s5118_s10  ;;  %p5125_p3 = scmp.lt.u32.totalorder %s5118_s10, %s5950_s9 }
  0xd2   : > { %p5121_p0 = pnand %p5119_p13, %p5390_p8 }
  0xd4   : > { %p5122_p1 = pneg %p5121_p0 }
  0xd6   : > { %p5127_p2 = pnand %p5125_p3, %p5122_p1 }
  0xd8   : > { %5130 = shalt.err (!%p5127_p2)
}
  0xd9   : > { %s5131_s17 = scalar_lea.vmem %s389_s18, 16  ;;  %s5138_s1 = scalar_lea.vmem %s389_s18, 32 }
  0xda   : > { %p5132_p5 = scmp.ne.s32.totalorder %s389_s18, %s5131_s17  ;;  %p5139_p4 = scmp.lt.s32.totalorder %s389_s18, %s389_s18 }
  0xdb   : > { %p5140_p10 = scmp.lt.s32.totalorder %s5138_s1, %s5131_s17 }
  0xdc   : > { %p5134_p7 = pnand %p5132_p5, %p5390_p8 }
  0xdd   : > { %p5141_p11 = por %p5140_p10, %p5139_p4 }
  0xde   : > { %p5135_p9 = pneg %p5134_p7 }
  0xe0   : > { %p5142_p12 = pnand %p5141_p11, %p5135_p9 }
  0xe2   : > { %5145 = shalt.err (!%p5142_p12)
}
  0xe3   : > { %4624 = dma.hbm_to_vmem [thread:$0]  (!%p5374_p6), %s5950_s9, 16, %s389_s18, [#allocation21]  }
  0xe4   : > { %s3720_s11 = sadd.s32 4294967294, %s5262_s16   ;;  %s5581_s23 = sadd.s32 1, %s5262_s16  }
  0xe5   : > { %s38_s26 = sadd.s32 1, %s5258_s15  ;;  %s35_s21 = ssub.s32 %s5262_s16, %s5581_s23 }
  0xe6   : > { %p45_p8 = scmp.ne.s32.totalorder %s5258_s15, %s5254_s14  ;;  %p36_p13 = scmp.eq.s32.totalorder %s35_s21, 0 }
  0xe7   : > { %p46_p0 = scmp.eq.s32.totalorder %s5262_s16, 0  ;;  %p51_p1 = scmp.ne.s32.totalorder %s5254_s14, %s5250_s13 }
  0xe8   : > { %p264_p3 = scmp.eq.s32.totalorder %s5358_s19, 1  ;;  %p5968_p5 = scmp.eq.s32.totalorder %s5358_s19, 0 }
  0xe9   : > { %s5593_s27 = scalar_select %p36_p13, %s5258_s15, %s38_s26  }
  0xea   : > { %p47_p2 = por %p46_p0, %p45_p8  ;;  %p5597_p7 = por %p5968_p5, %p51_p1 }
  0xeb   : > { %p5601_p6 = por %p264_p3, %p45_p8  ;;  %p270_p9 = scmp.eq.s32.totalorder %s3720_s11, 1 }
  0xec   : > { %p4642_p4 = scmp.lt.s32.totalorder %s5262_s16, 2  ;;  %s399_s10 = sand.u32 1, %s5258_s15  }
  0xed   : > { %s5970_s18 = scalar_select %p5601_p6, 1, 0 }
  0xee   : > { %p5607_p10 = por %p270_p9, %p51_p1  ;;  %s4552_s28 = smul.u32 40, %s399_s10 }
  0xef   : > { %p5611_p11 = pnand %p4642_p4, %p47_p2  ;;  %s4553_s12 = smul.u32 640, %s5262_s16 }
  0xf0   : > { %s5971_s20 = scalar_select %p5607_p10, 1, 0 }
  0xf1   : > { %s5619_s22 = scalar_lea.hbm %s5941_s0, %s4553_s12  ;;  %s403_s29 = scalar_lea.vmem [#allocation5], %s4552_s28 }
  0xf2   : > { %s410_s11 = sshll.u32 %s403_s29, 4  ;;  %s5623_s26 = scalar_lea.sflag [#allocation6], %s399_s10  ;;  %s5621_s11 = int_to_ptr.vmem [resolvable:$true] %s410_s11 }
  0xf3   : > { %s5146_s21 = scalar_lea.hbm %s5619_s22, 640  ;;  %p5148_p8 = pneg %p5611_p11 }
  0xf4   : > { %p5147_p12 = scmp.ne.s32.totalorder %s5619_s22, %s5146_s21  ;;  %s5151_s1 = scalar_lea.hbm %s5941_s0, 1280 }
  0xf5   : > { %p5152_p1 = scmp.lt.u32.totalorder %s5619_s22, %s5941_s0  ;;  %p5153_p3 = scmp.lt.u32.totalorder %s5151_s1, %s5146_s21 }
  0xf6   : > { %p5149_p13 = pnand %p5148_p8, %p5147_p12  ;;  %p5155_p5 = scmp.lt.u32.totalorder %s5146_s21, %s5619_s22 }
  0xf7   : > { %p5154_p2 = por %p5153_p3, %p5152_p1 }
  0xf8   : > { %p5150_p0 = pneg %p5149_p13 }
  0xf9   : > { %p5156_p9 = por %p5155_p5, %p5154_p2 }
  0xfb   : > { %p5157_p4 = pnand %p5156_p9, %p5150_p0 }
  0xfd   : > { %5160 = shalt.err (!%p5157_p4)
}
  0xfe   : > { %s5161_s10 = scalar_lea.vmem %s5621_s11, 640  ;;  %s5277_s28 = smov [#allocation5]  }
  0xff   : > { %p5162_p12 = scmp.ne.s32.totalorder %s5621_s11, %s5161_s10  ;;  %s5166_s29 = sshll.u32 %s5277_s28, 4  ;;  %s5167_s29 = int_to_ptr.vmem [resolvable:$false] %s5166_s29 }
 0x100   : > { %s5168_s24 = scalar_lea.vmem %s5167_s29, 1280  ;;  %p5169_p6 = scmp.lt.s32.totalorder %s5621_s11, %s5167_s29 }
 0x101   : > { %p5164_p13 = pnand %p5162_p12, %p5148_p8  ;;  %p5170_p1 = scmp.lt.s32.totalorder %s5168_s24, %s5161_s10 }
 0x103   : > { %p5165_p10 = pneg %p5164_p13  ;;  %p5171_p3 = por %p5170_p1, %p5169_p6 }
 0x105   : > { %p5172_p2 = pnand %p5171_p3, %p5165_p10 }
 0x107   : > { %5175 = shalt.err (!%p5172_p2)
}
 0x108   : > { %s5973_s25 = smov 4   ;;  %s5974_s21 = smov 64  }
 0x109   : > { %4628 = dma.hbm_to_vmem [thread:$0]  (!%p5611_p11), %s5619_s22, 640, %s5621_s11, %s5623_s26, %s5974_s21, %s5974_s21, %s5973_s25  }
 0x10a   : > { %s5975_s12 = sld [smem:[#allocation30_spill]] }
 0x110   : > { %p5976_p8 = scmp.ne.s32.totalorder %s5975_s12, 0 }
 0x111   : > { %s5657_s17 = sand.u32 (!%p5976_p8), 1, %s5254_s14  }
 0x112   : > { %422 = sbr.rel (%p5976_p8) target bundleno = 1474 (0x5c2), region = 60  ;;  %s425_s10 = scalar_lea.sflag (!%p5976_p8), [#allocation6], %s5657_s17 }
 0x113   : > { %s4554_s1 = smul.u32 (!%p5976_p8), 40, %s5657_s17 }
 0x115   : > { %s5661_s28 = scalar_lea.vmem (!%p5976_p8), [#allocation5], %s4554_s1 }
 0x119   : > { %5221 = dma.done.wait (%p5597_p7), %s425_s10, 640  }
 0x11a   : > { %5223 = vsyncadd (%p5597_p7), %s425_s10, 4294966656  ;;  %p5977_p6 = scmp.eq.s32.totalorder %s5358_s19, 0 }
 0x11c   : > { %5225 = dma.done.wait (%p5977_p6), [#allocation9], 1152   ;;  %p5978_p10 = pmov %p5977_p6 }
 0x11d   : > { %p5979_p11 = pmov %p5977_p6 }
 0x11e   : > { %5227 = vsyncadd (%p5978_p10), [#allocation9], 4294966144 }
 0x11f   : > { %5229 = dma.done.wait (%p5979_p11), [#allocation12], 6160   ;;  %p5980_p0 = pmov %p5977_p6 }
 0x121   : > { %5231 = vsyncadd (%p5980_p0), [#allocation12], 4294961136  ;;  %p5981_p5 = pmov %p5980_p0 }
 0x122   : > { %p5982_p9 = pmov %p5980_p0 }
 0x123   : > { %5233 = dma.done.wait (%p5981_p5), [#allocation15], 6160  }
 0x124   : > { %5235 = vsyncadd (%p5982_p9), [#allocation15], 4294961136  ;;  %p5983_p7 = pmov %p5980_p0 }
 0x125   : > { %p5984_p4 = pmov %p5980_p0 }
 0x126   : > { %5237 = dma.done.wait (%p5983_p7), [#allocation18], 6160  }
 0x127   : > { %5239 = vsyncadd (%p5984_p4), [#allocation18], 4294961136  ;;  %p5985_p12 = pmov %p5980_p0 }
 0x128   : > { %p5986_p13 = pmov %p5980_p0 }
 0x129   : > { %5241 = dma.done.wait (%p5985_p12), [#allocation21], 16  }
 0x12a   : > { %5243 = vsyncadd (%p5986_p13), [#allocation21], 4294967280  ;;  %v5278_v0 = vmov 0   ;;  %v4703_v1 = vld [vmem:[#allocation10] sm:$0xff]   ;;  %v4704_v2 = vld [vmem:[#allocation10 + $0x8] sm:$0xff]   ;;  %vm622_vm1 = vcmask 523264  }
 0x12b   : > { %4701 = vset.pattern.permute.xlu0 %v5278_v0  ;;  %528 = vst [vmem:[#allocation4 + $0x10] sm:$0x3] %v5278_v0  ;;  %551 = vst [vmem:[#allocation3 + $0x10] sm:$0x3] %v5278_v0  ;;  %4702 = vset.pattern.permute.xlu1 %v5278_v0  ;;  %vm580_vm0 = vsmask.f32 4352 }
 0x12c   : > { %4168 = vmatprep.subr.bf16.mxu0 %v4703_v1  ;;  %4180 = vmatprep.subr.bf16.mxu1 %v4703_v1  ;;  %v4705_v3 = vld [vmem:[#allocation10 + $0x10] sm:$0xff]   ;;  %v4706_v6 = vld [vmem:[#allocation10 + $0x18] sm:$0xff]   ;;  %v503_v18 = vld [vmem:[#allocation8 + $0xf] sm:$0xff]  ;;  %vm509_vm2 = vcmask 1043456   ;;  %vm510_vm3 = vsmask.f32 3328 }
 0x12d   : > { %4169 = vmatpush3.bf16.msra.mxu0 %v4703_v1  ;;  %4181 = vmatpush3.bf16.msra.mxu1 %v4703_v1  ;;  %v4707_v4 = vld [vmem:[%s5661_s28] sm:$0xf8]   ;;  %v4708_v5 = vld [vmem:[%s5661_s28 + $0x8] sm:$0x7f]   ;;  %v4709_v11 = vld [vmem:[%s5661_s28 + $0x14] sm:$0xf8]  }
 0x12e   : > { %4170 = vmatprep.subr.bf16.mxu0 %v4704_v2  ;;  %4182 = vmatprep.subr.bf16.mxu1 %v4704_v2  ;;  %v582_v7 = vshrl.u32 %v4707_v4, 16  ;;  %v585_v8 = vshll.u32 %v4707_v4, 16  ;;  %v590_v9 = vshrl.u32 %v4708_v5, 16  ;;  %v593_v10 = vshll.u32 %v4708_v5, 16  ;;  %v4710_v12 = vld [vmem:[%s5661_s28 + $0x1c] sm:$0x7f]   ;;  %vm5698_vm4 = vmand %vm509_vm2, %vm510_vm3 }
 0x12f   : > { %v502_v13 = vld [vmem:[#allocation8 + $0x7] sm:$0xff]  ;;  %v773_v19 = vshrl.u32 %v4709_v11, 16  ;;  %v776_v20 = vshll.u32 %v4709_v11, 16  ;;  %v781_v21 = vshrl.u32 %v4710_v12, 16  ;;  %v784_v22 = vshll.u32 %v4710_v12, 16  ;;  %v4713_v41 = vld [vmem:[#allocation13 + $0x8] sm:$0xff]  }
 0x130   : > { %v584_v14 = vrot.slane %v582_v7, 3  ;;  %v587_v15 = vrot.slane %v585_v8, 4  ;;  %v592_v16 = vrot.slane %v590_v9, 3  ;;  %v595_v17 = vrot.slane %v593_v10, 4  ;;  %682 = vperm.xlu0 %4701, %v502_v13   ;;  %v504_v23 = vld [vmem:[#allocation8 + $0x17] sm:$0x3f] }
 0x131   : > { %4171 = vmatpush3.bf16.msra.mxu0 %v4704_v2  ;;  %4183 = vmatpush3.bf16.msra.mxu1 %v4704_v2  ;;  %v775_v26 = vrot.slane %v773_v19, 3  ;;  %v778_v27 = vrot.slane %v776_v20, 4  ;;  %v783_v28 = vrot.slane %v781_v21, 3  ;;  %v786_v29 = vrot.slane %v784_v22, 4  ;;  %v4711_v34 = vld [vmem:[#allocation13] sm:$0xff]   ;;  %v4714_v46 = vld [vmem:[#allocation13 + $0x48] sm:$0xff]  }
 0x132   : > { %4172 = vmatprep.subr.bf16.mxu0 %v4705_v3  ;;  %4184 = vmatprep.subr.bf16.mxu1 %v4705_v3  ;;  %v588_v24 = vor.u32 %v587_v15, %v584_v14  ;;  %v596_v25 = vor.u32 %v595_v17, %v592_v16  ;;  %v512_v35 = vld [vmem:[#allocation2] sm:$0xf]  ;;  %v530_v37 = vld [vmem:[#allocation2 + $0x14] sm:$0xf]  ;;  %vm515_vm5 = vcmask 1043458   ;;  %v4721_v54 = vld [vmem:[#allocation13 + $0x28] sm:$0xff]  }
 0x133   : > { %692 = vperm.xlu1 %4702, %v504_v23   ;;  %v779_v31 = vor.u32 %v778_v27, %v775_v26  ;;  %v787_v32 = vor.u32 %v786_v29, %v783_v28  ;;  %v513_v38 = vsel %vm5698_vm4, 0, %v512_v35  ;;  %v531_v39 = vsel %vm5698_vm4, 0, %v530_v37  ;;  %v4712_v40 = vld [vmem:[#allocation13 + $0x40] sm:$0xff]   ;;  %v518_v43 = vld [vmem:[#allocation2 + $0xc] sm:$0xc]  ;;  %v4717_v50 = vld [vmem:[#allocation13 + $0x18] sm:$0xff]  }
 0x134   : > { %v597_v30 = vsel %vm580_vm0, %v588_v24, %v596_v25  ;;  %687 = vperm.xlu0 %4701, %v503_v18   ;;  %514 = vst [vmem:[#allocation2] sm:$0xf] %v513_v38  ;;  %532 = vst [vmem:[#allocation2 + $0x14] sm:$0xf] %v531_v39  ;;  %vm516_vm6 = vsmask.f32 7946 }
 0x135   : > { %4173 = vmatpush3.bf16.msra.mxu0 %v4705_v3  ;;  %4185 = vmatpush3.bf16.msra.mxu1 %v4705_v3  ;;  %v788_v33 = vsel %vm580_vm0, %v779_v31, %v787_v32  ;;  %vm5706_vm7 = vmand %vm515_vm5, %vm516_vm6  ;;  %v533_v45 = vld [vmem:[#allocation2 + $0x20] sm:$0xc]  ;;  %v4715_v47 = vld [vmem:[#allocation13 + $0x10] sm:$0xff]   ;;  %vm708_vm8 = vsmask.f32 7440  ;;  %vm743_vm9 = vcmask 1043459  }
 0x136   : > { %4174 = vmatprep.subr.bf16.mxu0 %v4706_v6  ;;  %4186 = vmatprep.subr.bf16.mxu1 %v4706_v6  ;;  %v519_v44 = vsel %vm5706_vm7, 0, %v518_v43  ;;  %v534_v48 = vsel %vm5706_vm7, 0, %v533_v45  ;;  %v4716_v49 = vld [vmem:[#allocation13 + $0x50] sm:$0xff]   ;;  %v4718_v51 = vld [vmem:[#allocation13 + $0x58] sm:$0xff]   ;;  %v4719_v52 = vld [vmem:[#allocation13 + $0x20] sm:$0xff]   ;;  %vm751_vm11 = vcmask 1042432  }
 0x137   : > { %4176 = vmatprep.mubr.msk.bf16.mxu0 %vm622_vm1, %v597_v30  ;;  %4188 = vmatprep.mubr.msk.bf16.mxu1 %vm622_vm1, %v788_v33  ;;  %520 = vst [vmem:[#allocation2 + $0xc] sm:$0xc] %v519_v44  ;;  %535 = vst [vmem:[#allocation2 + $0x20] sm:$0xc] %v534_v48  ;;  %v4720_v53 = vld [vmem:[#allocation13 + $0x60] sm:$0xff]   ;;  %v4722_v55 = vld [vmem:[#allocation13 + $0x68] sm:$0xff]  }
 0x138   : > { %v4723_v56 = vld [vmem:[#allocation13 + $0x30] sm:$0xff]   ;;  %v4725_v58 = vld [vmem:[#allocation13 + $0x38] sm:$0xff]   ;;  %v5714_v60 = vld [vmem:[#allocation13 + $0xc0] sm:$0xff]   ;;  %vm744_vm10 = vsmask.f32 7950  ;;  %s4555_s3 = smul.u32 20, %s5657_s17 }
 0x139   : > { %4175 = vmatpush3.bf16.msra.mxu0 %v4706_v6  ;;  %4187 = vmatpush3.bf16.msra.mxu1 %v4706_v6  ;;  %v4724_v57 = vld [vmem:[#allocation13 + $0x70] sm:$0xff]   ;;  %v4726_v59 = vld [vmem:[#allocation13 + $0x78] sm:$0xff]   ;;  %v5717_v61 = vld [vmem:[#allocation13 + $0x80] sm:$0xff]   ;;  %vm752_vm12 = vsmask.f32 2304  ;;  %s4556_s22 = smul.u32 320, %s5358_s19 }
 0x13a   : > { %4212 = vmatprep.subr.bf16.mxu1 %v4711_v34  ;;  %4192 = vmatprep.subr.bf16.mxu0 %v4712_v40  ;;  %v3743_v62 = vld [vmem:[#allocation11] ss:$0 sm:$0xff]  ;;  %vm5734_vm13 = vmand %vm743_vm9, %vm744_vm10  ;;  %vm1318_vm2 = vsmask.f32 7424  ;;  %s500_s30 = scalar_lea.vmem [#allocation22], %s4555_s3  ;;  %s5997_s24 = sld [smem:[#allocation33_spill]] }
 0x13b   : > { %v746_v43 = vld [vmem:[#allocation2] sm:$0x8]  ;;  %v892_v44 = vld [vmem:[#allocation2 + $0x14] sm:$0x8]  ;;  %vm5744_vm14 = vmor %vm510_vm3, %vm708_vm8  ;;  %vm2294_vm3 = vsmask.f32 5376 }
 0x13c   : > { %4177 = vmatmul.mubr.msk.bf16.vlgmr.msra.gmra.mrb[0].mxu0 %vm622_vm1, %v596_v25  ;;  %4189 = vmatmul.mubr.msk.bf16.vlgmr.msra.gmra.mrb[0].mxu1 %vm622_vm1, %v787_v32  ;;  %vm5750_vm15 = vmand %vm751_vm11, %vm752_vm12  ;;  %vm1066_vm1 = vcmask 1044480   ;;  %s3561_s11 = sshll.u32 %s500_s30, 4  ;;  %s3548_s19 = scalar_lea.sflag [#allocation7], %s5657_s17  ;;  %s5895_s11 = int_to_ptr.vmem [resolvable:$true] %s3561_s11 }
 0x13d   : > { %4213 = vmatpush3.bf16.msra.mxu1 %v4711_v34  ;;  %4193 = vmatpush3.bf16.msra.mxu0 %v4712_v40  ;;  %s5176_s21 = scalar_lea.vmem %s5895_s11, 320  ;;  %p5998_p3 = scmp.ne.s32.totalorder %s5970_s18, 0 }
 0x13e   : > { %4214 = vmatprep.subr.bf16.mxu1 %v4713_v41  ;;  %4194 = vmatprep.subr.bf16.mxu0 %v4714_v46  ;;  %p5177_p1 = scmp.ne.s32.totalorder %s5895_s11, %s5176_s21  ;;  %s5279_s12 = smov [#allocation22]  }
 0x13f   : > { %s5180_s1 = sshll.u32 %s5279_s12, 4  ;;  %s5181_s1 = int_to_ptr.vmem [resolvable:$false] %s5180_s1 }
 0x140   : > { %s5893_s25 = scalar_lea.hbm %s5997_s24, %s4556_s22  ;;  %p5178_p2 = pnand %p5177_p1, %p5998_p3 }
 0x141   : > { %4215 = vmatpush3.bf16.msra.mxu1 %v4713_v41  ;;  %4195 = vmatpush3.bf16.msra.mxu0 %v4714_v46  ;;  %s5182_s10 = scalar_lea.vmem %s5181_s1, 640  ;;  %p5183_p6 = scmp.lt.s32.totalorder %s5895_s11, %s5181_s1 }
 0x142   : > { %4216 = vmatprep.subr.bf16.mxu1 %v4715_v47  ;;  %4196 = vmatprep.subr.bf16.mxu0 %v4716_v49  ;;  %p5179_p8 = pneg %p5178_p2  ;;  %p5184_p10 = scmp.lt.s32.totalorder %s5182_s10, %s5176_s21 }
 0x144   : > { %p5185_p11 = por %p5184_p10, %p5183_p6 }
 0x145   : > { %4217 = vmatpush3.bf16.msra.mxu1 %v4715_v47  ;;  %4197 = vmatpush3.bf16.msra.mxu0 %v4716_v49 }
 0x146   : > { %4218 = vmatprep.subr.bf16.mxu1 %v4717_v50  ;;  %4198 = vmatprep.subr.bf16.mxu0 %v4718_v51  ;;  %p5186_p0 = pnand %p5185_p11, %p5179_p8 }
 0x149   : > { %4219 = vmatpush3.bf16.msra.mxu1 %v4717_v50  ;;  %4199 = vmatpush3.bf16.msra.mxu0 %v4718_v51 }
 0x14a   : > { %4220 = vmatprep.subr.bf16.mxu1 %v4719_v52  ;;  %4200 = vmatprep.subr.bf16.mxu0 %v4720_v53 }
 0x14d   : > { %4221 = vmatpush3.bf16.msra.mxu1 %v4719_v52  ;;  %4201 = vmatpush3.bf16.msra.mxu0 %v4720_v53 }
 0x14e   : > { %4222 = vmatprep.subr.bf16.mxu1 %v4721_v54  ;;  %4202 = vmatprep.subr.bf16.mxu0 %v4722_v55 }
 0x151   : > { %4223 = vmatpush3.bf16.msra.mxu1 %v4721_v54  ;;  %4203 = vmatpush3.bf16.msra.mxu0 %v4722_v55 }
 0x152   : > { %4224 = vmatprep.subr.bf16.mxu1 %v4723_v56  ;;  %4204 = vmatprep.subr.bf16.mxu0 %v4724_v57 }
 0x155   : > { %4225 = vmatpush3.bf16.msra.mxu1 %v4723_v56  ;;  %4205 = vmatpush3.bf16.msra.mxu0 %v4724_v57 }
 0x156   : > { %4226 = vmatprep.subr.bf16.mxu1 %v4725_v58  ;;  %4206 = vmatprep.subr.bf16.mxu0 %v4726_v59 }
 0x159   : > { %4227 = vmatpush3.bf16.msra.mxu1 %v4725_v58  ;;  %4207 = vmatpush3.bf16.msra.mxu0 %v4726_v59 }
 0x15a   : > { %4252 = vmatprep.subr.bf16.mxu1 %v5714_v60  ;;  %4232 = vmatprep.subr.bf16.mxu0 %v5717_v61 }
 0x1af   : > { %v5720_v63 = vpop.permute.xlu0 %682 }
 0x1b2   : > { %v5722_v0 = vpop.permute.xlu1 %692 }
 0x1b3   : > { %v5728_v25 = vpop.permute.xlu0 %687 }
 0x20f   : > { %v4178_v1 = vpop.f32.mrb[0].mxu0  ;;  %v4190_v2 = vpop.f32.mrb[0].mxu1 }
 0x210   : > { %v672_v3 = vadd.f32 %v4178_v1, %v3743_v62  ;;  %v838_v4 = vadd.f32 %v4190_v2, %v3743_v62  ;;  %v663_v5 = vpop.f32.mrb[1].mxu0  ;;  %v829_v6 = vpop.f32.mrb[1].mxu1 }
 0x211   : > { %v664_v7 = vadd.f32 %v3743_v62, %v663_v5  ;;  %v830_v8 = vadd.f32 %v3743_v62, %v829_v6  ;;  %v4179_v9 = vpop.f32.mrb[2].mxu0  ;;  %v4191_v10 = vpop.f32.mrb[2].mxu1 }
 0x212   : > { %v679_v11 = vmax.f32 %v672_v3, 0.0  ;;  %v845_v12 = vmax.f32 %v838_v4, 0.0  ;;  %v666_v13 = vpop.f32.mrb[3].mxu0  ;;  %v832_v14 = vpop.f32.mrb[3].mxu1 }
 0x213   : > { %v677_v15 = vmax.f32 %v664_v7, 0.0  ;;  %v843_v16 = vmax.f32 %v830_v8, 0.0  ;;  %v667_v17 = vadd.f32 %v3743_v62, %v666_v13  ;;  %v833_v18 = vadd.f32 %v3743_v62, %v832_v14  ;;  %v754_v13 = vld [vmem:[#allocation2 + $0xc] sm:$0x7] }
 0x214   : > { %v697_v19 = vmul.f32 %v5722_v0, %v679_v11  ;;  %v848_v20 = vmul.f32 %v845_v12, %v5722_v0 }
 0x215   : > { %v695_v21 = vmul.f32 %v5720_v63, %v677_v15  ;;  %v846_v22 = vmul.f32 %v843_v16, %v5720_v63  ;;  %v678_v23 = vmax.f32 %v667_v17, 0.0  ;;  %v844_v24 = vmax.f32 %v833_v18, 0.0 }
 0x216   : > { %v3960_v26 = vpack.c.bf16 %v697_v19, %v697_v19  ;;  %v3963_v27 = vpack.c.bf16 %v848_v20, %v848_v20 }
 0x217   : > { %v3958_v28 = vpack.c.bf16 %v695_v21, %v695_v21  ;;  %v3961_v29 = vpack.c.bf16 %v846_v22, %v846_v22  ;;  %v696_v30 = vmul.f32 %v5728_v25, %v678_v23  ;;  %v847_v31 = vmul.f32 %v844_v24, %v5728_v25  ;;  %v897_v21 = vld [vmem:[#allocation2 + $0x20] sm:$0x7] }
 0x218   : > { %v730_v32 = vshll.u32 %v3960_v26, 16  ;;  %v734_v33 = vshrl.u32 %v3960_v26, 16  ;;  %v879_v34 = vshll.u32 %v3963_v27, 16  ;;  %v883_v35 = vshrl.u32 %v3963_v27, 16 }
 0x219   : > { %v711_v37 = vshll.u32 %v3958_v28, 16  ;;  %v714_v38 = vshrl.u32 %v3958_v28, 16  ;;  %v860_v39 = vshll.u32 %v3961_v29, 16  ;;  %v863_v40 = vshrl.u32 %v3961_v29, 16 }
 0x21a   : > { %v3959_v45 = vpack.c.bf16 %v696_v30, %v696_v30  ;;  %v3962_v46 = vpack.c.bf16 %v847_v31, %v847_v31  ;;  %v732_v47 = vrot.slane %v730_v32, 5  ;;  %v736_v48 = vrot.slane %v734_v33, 4 }
 0x21b   : > { %v713_v49 = vrot.slane %v711_v37, 5  ;;  %v716_v50 = vrot.slane %v714_v38, 4  ;;  %v862_v51 = vrot.slane %v860_v39, 5  ;;  %v865_v52 = vrot.slane %v863_v40, 4 }
 0x21c   : > { %v720_v53 = vshll.u32 %v3959_v45, 16  ;;  %v724_v54 = vshrl.u32 %v3959_v45, 16  ;;  %v869_v55 = vshll.u32 %v3962_v46, 16  ;;  %v873_v56 = vshrl.u32 %v3962_v46, 16 }
 0x21d   : > { %v717_v57 = vor.u32 %v716_v50, %v713_v49  ;;  %v747_v58 = vsel %vm5734_vm13, %v713_v49, %v746_v43  ;;  %v866_v59 = vor.u32 %v865_v52, %v862_v51  ;;  %v893_v62 = vsel %vm5734_vm13, %v862_v51, %v892_v44 }
 0x21e   : > { %748 = vst [vmem:[#allocation2] sm:$0x8] %v747_v58  ;;  %894 = vst [vmem:[#allocation2 + $0x14] sm:$0x8] %v893_v62  ;;  %v722_v2 = vrot.slane %v720_v53, 5  ;;  %v726_v3 = vrot.slane %v724_v54, 4  ;;  %v737_v8 = vor.u32 %v736_v48, %v732_v47 }
 0x21f   : > { %v871_v4 = vrot.slane %v869_v55, 5  ;;  %v875_v5 = vrot.slane %v873_v56, 4  ;;  %v718_v6 = vrot.slane %v717_v57, 4  ;;  %v867_v7 = vrot.slane %v866_v59, 4  ;;  %v4734_v56 = vld [vmem:[#allocation13 + $0xc8] sm:$0xff]  }
 0x220   : > { %v881_v9 = vrot.slane %v879_v34, 5  ;;  %v727_v10 = vor.u32 %v726_v3, %v722_v2  ;;  %v885_v14 = vrot.slane %v883_v35, 4  ;;  %v738_v17 = vrot.slane %v737_v8, 4  ;;  %v4736_v3 = vld [vmem:[#allocation13 + $0xd0] sm:$0xff]   ;;  %v4742_v8 = vld [vmem:[#allocation13 + $0xe8] sm:$0xff]  }
 0x221   : > { %v876_v11 = vor.u32 %v875_v5, %v871_v4  ;;  %v723_v15 = vsel %vm5744_vm14, %v718_v6, %v722_v2  ;;  %v872_v16 = vsel %vm5744_vm14, %v867_v7, %v871_v4  ;;  %v4735_v2 = vld [vmem:[#allocation13 + $0x88] sm:$0xff]   ;;  %v4737_v4 = vld [vmem:[#allocation13 + $0x90] sm:$0xff]   ;;  %v4738_v5 = vld [vmem:[#allocation13 + $0xd8] sm:$0xff]  }
 0x222   : > { %v728_v18 = vrot.slane %v727_v10, 4  ;;  %749 = vst [vmem:[#allocation2 + $0x4] sm:$0xf] %v723_v15  ;;  %895 = vst [vmem:[#allocation2 + $0x18] sm:$0xf] %v872_v16  ;;  %v886_v20 = vor.u32 %v885_v14, %v881_v9  ;;  %v755_v22 = vsel %vm5750_vm15, %v738_v17, %v754_v13  ;;  %v4740_v6 = vld [vmem:[#allocation13 + $0xe0] sm:$0xff]  }
 0x223   : > { %v877_v19 = vrot.slane %v876_v11, 4  ;;  %756 = vst [vmem:[#allocation2 + $0xc] sm:$0x7] %v755_v22  ;;  %v4741_v7 = vld [vmem:[#allocation13 + $0xa0] sm:$0xff]   ;;  %v4743_v11 = vld [vmem:[#allocation13 + $0xa8] sm:$0xff]   ;;  %v4744_v13 = vld [vmem:[#allocation13 + $0xf0] sm:$0xff]  }
 0x224   : > { %v733_v23 = vsel %vm5744_vm14, %v728_v18, %v732_v47  ;;  %v887_v26 = vrot.slane %v886_v20, 4  ;;  %v4745_v17 = vld [vmem:[#allocation13 + $0xb0] sm:$0xff]   ;;  %v4746_v18 = vld [vmem:[#allocation13 + $0xf8] sm:$0xff]  }
 0x225   : > { %v882_v24 = vsel %vm5744_vm14, %v877_v19, %v881_v9  ;;  %750 = vst [vmem:[#allocation2 + $0x8] sm:$0xf] %v733_v23 }
 0x226   : > { %896 = vst [vmem:[#allocation2 + $0x1c] sm:$0xf] %v882_v24  ;;  %v898_v27 = vsel %vm5750_vm15, %v887_v26, %v897_v21  ;;  %v4747_v24 = vld [vmem:[#allocation13 + $0xb8] sm:$0xff]   ;;  %v4748_v26 = vld [vmem:[#allocation13 + $0x140] sm:$0xff]  }
 0x227   : > { %899 = vst [vmem:[#allocation2 + $0x20] sm:$0x7] %v898_v27 }
 0x229   : > { %v4727_v28 = vld [vmem:[#allocation2] sm:$0xf8]   ;;  %v4731_v29 = vld [vmem:[#allocation2 + $0x14] sm:$0xff]  }
 0x22a   : > { %v903_v30 = vld [vmem:[#allocation2 + $0xc] sm:$0x3]  ;;  %v949_v32 = vshrl.u32 %v4727_v28, 16  ;;  %v1067_v38 = vrot.slane %v4727_v28, 3  ;;  %v1322_v39 = vshll.u32 %v4731_v29, 16  ;;  %v1320_v40 = vshrl.u32 %v4731_v29, 16 }
 0x22b   : > { %v920_v31 = vld [vmem:[#allocation2 + $0xc] sm:$0x7]  ;;  %v952_v45 = vshll.u32 %v4727_v28, 16  ;;  %v4749_v14 = vld [vmem:[#allocation2 + $0x14] sm:$0xf8]  }
 0x22c   : > { %v902_v33 = vld [vmem:[#allocation2 + $0x8] sm:$0xf]  ;;  %v951_v44 = vrot.slane %v949_v32, 3  ;;  %v1324_v47 = vrot.slane %v1322_v39, 1  ;;  %v1592_v19 = vshrl.u32 %v4749_v14, 16  ;;  %v1595_v20 = vshll.u32 %v4749_v14, 16 }
 0x22d   : > { %v5766_v34 = vld [vmem:[#allocation2 + $0x1c] ss:$0 sps:$4 sm:$0xff]   ;;  %v3767_v35 = vcombine.low %v902_v33, %v920_v31  ;;  %v3776_v37 = vcombine.low %v902_v33, %v903_v30  ;;  %v954_v51 = vrot.slane %v952_v45, 4  ;;  %v4752_v33 = vld [vmem:[#allocation13 + $0x100] sm:$0xff]  }
 0x22e   : > { %v1327_v43 = vshll.u32 %v5766_v34, 16  ;;  %v1325_v53 = vor.u32 %v1324_v47, %v1320_v40  ;;  %v1437_v9 = vld [vmem:[#allocation2 + $0x1c] sm:$0xf]  ;;  %v1438_v23 = vld [vmem:[#allocation2 + $0x20] sm:$0x3]  ;;  %v1594_v27 = vrot.slane %v1592_v19, 3 }
 0x22f   : > { %v1068_v46 = vrot.slane %v3776_v37, 3  ;;  %v957_v48 = vshrl.u32 %v3767_v35, 16  ;;  %v960_v49 = vshll.u32 %v3767_v35, 16  ;;  %v955_v58 = vor.u32 %v954_v51, %v951_v44  ;;  %v4753_v37 = vld [vmem:[#allocation13 + $0x148] sm:$0xff]   ;;  %v4756_v44 = vld [vmem:[#allocation13 + $0x150] sm:$0xff]   ;;  %v4758_v47 = vld [vmem:[#allocation13 + $0x158] sm:$0xff]  }
 0x230   : > { %v5769_v50 = vrot.slane %v1327_v43, 1  ;;  %v1597_v28 = vrot.slane %v1595_v20, 4  ;;  %v3805_v30 = vcombine.low %v1437_v9, %v1438_v23  ;;  %v4751_v40 = vld [vmem:[#allocation2 + $0x1c] ss:$0 sps:$4 sm:$0x77]   ;;  %v4755_v43 = vld [vmem:[#allocation13 + $0x108] sm:$0xff]  }
 0x231   : > { %v1069_v52 = vsel %vm1066_vm1, %v1067_v38, %v1068_v46  ;;  %v959_v54 = vrot.slane %v957_v48, 3  ;;  %v962_v55 = vrot.slane %v960_v49, 4  ;;  %v4759_v48 = vld [vmem:[#allocation13 + $0x118] sm:$0xff]   ;;  %v4760_v49 = vld [vmem:[#allocation13 + $0x160] sm:$0xff]   ;;  %v4762_v51 = vld [vmem:[#allocation13 + $0x168] sm:$0xff]  }
 0x232   : > { %4228 = vmatprep.mubr.bf16.mxu1 %v1069_v52  ;;  %v1330_v57 = vsel %vm1318_vm2, %v1325_v53, %v5769_v50  ;;  %v1598_v35 = vor.u32 %v1597_v28, %v1594_v27  ;;  %v1467_v38 = vrot.slane %v3805_v30, 3  ;;  %v4763_v52 = vld [vmem:[#allocation13 + $0x128] sm:$0xff]   ;;  %v4764_v53 = vld [vmem:[#allocation13 + $0x170] sm:$0xff]  }
 0x233   : > { %4229 = vmatmul.mubr.bf16.vlgmr.msra.gmra.mrb[4].mxu1 %v1068_v46  ;;  %v963_v59 = vor.u32 %v962_v55, %v959_v54  ;;  %v4757_v46 = vld [vmem:[#allocation13 + $0x110] sm:$0xff]   ;;  %v4766_v55 = vld [vmem:[#allocation13 + $0x178] sm:$0xff]  }
 0x234   : > { %4253 = vmatpush3.bf16.msra.mxu1 %v5714_v60  ;;  %4268 = vmatprep.mubr.bf16.mxu1 %v1330_v57  ;;  %v4739_v60 = vld [vmem:[#allocation13 + $0x98] sm:$0xff]   ;;  %v4765_v54 = vld [vmem:[#allocation13 + $0x130] sm:$0xff]  }
 0x235   : > { %v964_v62 = vsel %vm580_vm0, %v955_v58, %v963_v59  ;;  %4254 = vmatprep.subr.bf16.mxu1 %v4734_v56  ;;  %v548_v57 = vld [vmem:[#allocation3 + $0xc] sm:$0xc] }
 0x236   : > { %4208 = vmatprep.mubr.bf16.mxu0 %v964_v62  ;;  %v549_v58 = vsel %vm5706_vm7, 0, %v548_v57  ;;  %v4769_v62 = vld [vmem:[#allocation16 + $0x48] sm:$0xff]  }
 0x237   : > { %4209 = vmatmul.mubr.bf16.vlgmr.msra.gmra.mrb[4].mxu0 %v963_v59  ;;  %550 = vst [vmem:[#allocation3 + $0xc] sm:$0xc] %v549_v58  ;;  %v4768_v59 = vld [vmem:[#allocation16 + $0x40] sm:$0xff]  }
 0x238   : > { %4233 = vmatpush3.bf16.msra.mxu0 %v5717_v61  ;;  %4255 = vmatpush3.bf16.msra.mxu1 %v4734_v56  ;;  %v1570_v61 = vld [vmem:[#allocation2 + $0x20] sm:$0x7]  ;;  %v4767_v56 = vld [vmem:[#allocation13 + $0x138] sm:$0xff]  }
 0x239   : > { %4248 = vmatprep.mubr.bf16.mxu0 %v4731_v29  ;;  %4234 = vmatprep.subr.bf16.mxu0 %v4735_v2  ;;  %v3814_v10 = vcombine.low %v1437_v9, %v1570_v61  ;;  %v1331_v29 = vshrl.u32 %v5766_v34, 16  ;;  %v1466_v34 = vrot.slane %v4749_v14, 3  ;;  %v4776_v9 = vld [vmem:[#allocation16 + $0x18] sm:$0xff]   ;;  %v4777_v61 = vld [vmem:[#allocation16 + $0x68] sm:$0xff]  }
 0x23a   : > { %4256 = vmatprep.subr.bf16.mxu1 %v4736_v3  ;;  %v4781_v14 = vld [vmem:[#allocation16 + $0x78] sm:$0xff]  }
 0x23b   : > { %v1600_v15 = vshrl.u32 %v3814_v10, 16  ;;  %v1603_v16 = vshll.u32 %v3814_v10, 16  ;;  %v1333_v32 = vor.u32 %v1331_v29, %v5769_v50  ;;  %v1468_v45 = vsel %vm1066_vm1, %v1466_v34, %v1467_v38  ;;  %v4761_v50 = vld [vmem:[#allocation13 + $0x120] sm:$0xff]  }
 0x23c   : > { %4235 = vmatpush3.bf16.msra.mxu0 %v4735_v2  ;;  %4257 = vmatpush3.bf16.msra.mxu1 %v4736_v3  ;;  %v545_v2 = vld [vmem:[#allocation3] sm:$0xf]  ;;  %v4770_v3 = vld [vmem:[#allocation16] sm:$0xff]  }
 0x23d   : > { %4236 = vmatprep.subr.bf16.mxu0 %v4737_v4  ;;  %4258 = vmatprep.subr.bf16.mxu1 %v4738_v5  ;;  %v1602_v21 = vrot.slane %v1600_v15, 3  ;;  %v1605_v22 = vrot.slane %v1603_v16, 4  ;;  %v4778_v10 = vld [vmem:[#allocation16 + $0x20] sm:$0xff]   ;;  %v4782_v15 = vld [vmem:[#allocation16 + $0x30] sm:$0xff]  }
 0x23e   : > { %v5784_v16 = vld [vmem:[#allocation16 + $0xc0] sm:$0xff]  }
 0x23f   : > { %v1606_v31 = vor.u32 %v1605_v22, %v1602_v21 }
 0x240   : > { %4237 = vmatpush3.bf16.msra.mxu0 %v4737_v4  ;;  %4259 = vmatpush3.bf16.msra.mxu1 %v4738_v5  ;;  %v546_v4 = vsel %vm5698_vm4, 0, %v545_v2  ;;  %v4771_v5 = vld [vmem:[#allocation16 + $0x50] sm:$0xff]  }
 0x241   : > { %4238 = vmatprep.subr.bf16.mxu0 %v4739_v60  ;;  %4260 = vmatprep.subr.bf16.mxu1 %v4740_v6  ;;  %v1607_v39 = vsel %vm580_vm0, %v1598_v35, %v1606_v31  ;;  %547 = vst [vmem:[#allocation3] sm:$0xf] %v546_v4 }
 0x244   : > { %4239 = vmatpush3.bf16.msra.mxu0 %v4739_v60  ;;  %4261 = vmatpush3.bf16.msra.mxu1 %v4740_v6  ;;  %v4772_v60 = vld [vmem:[#allocation16 + $0x8] sm:$0xff]   ;;  %v4773_v6 = vld [vmem:[#allocation16 + $0x58] sm:$0xff]  }
 0x245   : > { %4240 = vmatprep.subr.bf16.mxu0 %v4741_v7  ;;  %4262 = vmatprep.subr.bf16.mxu1 %v4742_v8 }
 0x248   : > { %4241 = vmatpush3.bf16.msra.mxu0 %v4741_v7  ;;  %4263 = vmatpush3.bf16.msra.mxu1 %v4742_v8  ;;  %v4774_v7 = vld [vmem:[#allocation16 + $0x10] sm:$0xff]   ;;  %v4775_v8 = vld [vmem:[#allocation16 + $0x60] sm:$0xff]  }
 0x249   : > { %4242 = vmatprep.subr.bf16.mxu0 %v4743_v11  ;;  %4264 = vmatprep.subr.bf16.mxu1 %v4744_v13 }
 0x24c   : > { %4243 = vmatpush3.bf16.msra.mxu0 %v4743_v11  ;;  %4265 = vmatpush3.bf16.msra.mxu1 %v4744_v13  ;;  %v4779_v11 = vld [vmem:[#allocation16 + $0x70] sm:$0xff]   ;;  %v4780_v13 = vld [vmem:[#allocation16 + $0x28] sm:$0xff]  }
 0x24d   : > { %4244 = vmatprep.subr.bf16.mxu0 %v4745_v17  ;;  %4266 = vmatprep.subr.bf16.mxu1 %v4746_v18 }
 0x250   : > { %4245 = vmatpush3.bf16.msra.mxu0 %v4745_v17  ;;  %4267 = vmatpush3.bf16.msra.mxu1 %v4746_v18  ;;  %v4788_v17 = vld [vmem:[#allocation16 + $0x38] sm:$0xff]   ;;  %v5787_v18 = vld [vmem:[#allocation16 + $0x80] sm:$0xff]  }
 0x251   : > { %4246 = vmatprep.subr.bf16.mxu0 %v4747_v24  ;;  %4292 = vmatprep.subr.bf16.mxu1 %v4748_v26 }
 0x253   : > { %4269 = vmatmul.mubr.bf16.vlgmr.msra.gmra.mrb[8].mxu1 %v1333_v32 }
 0x254   : > { %4247 = vmatpush3.bf16.msra.mxu0 %v4747_v24  ;;  %4293 = vmatpush3.bf16.msra.mxu1 %v4748_v26 }
 0x255   : > { %4308 = vmatprep.mubr.bf16.mxu1 %v1607_v39  ;;  %4272 = vmatprep.subr.bf16.mxu0 %v4752_v33 }
 0x256   : > { %4294 = vmatprep.subr.bf16.mxu1 %v4753_v37 }
 0x257   : > { %4249 = vmatmul.mubr.bf16.vlgmr.msra.gmra.mrb[8].mxu0 %v4751_v40 }
 0x258   : > { %4273 = vmatpush3.bf16.msra.mxu0 %v4752_v33  ;;  %4288 = vmatprep.mubr.bf16.mxu0 %v1468_v45 }
 0x259   : > { %4295 = vmatpush3.bf16.msra.mxu1 %v4753_v37  ;;  %4274 = vmatprep.subr.bf16.mxu0 %v4755_v43 }
 0x25a   : > { %4296 = vmatprep.subr.bf16.mxu1 %v4756_v44 }
 0x25c   : > { %4275 = vmatpush3.bf16.msra.mxu0 %v4755_v43 }
 0x25d   : > { %4297 = vmatpush3.bf16.msra.mxu1 %v4756_v44  ;;  %4276 = vmatprep.subr.bf16.mxu0 %v4757_v46 }
 0x25e   : > { %4298 = vmatprep.subr.bf16.mxu1 %v4758_v47 }
 0x260   : > { %4277 = vmatpush3.bf16.msra.mxu0 %v4757_v46 }
 0x261   : > { %4299 = vmatpush3.bf16.msra.mxu1 %v4758_v47  ;;  %4278 = vmatprep.subr.bf16.mxu0 %v4759_v48 }
 0x262   : > { %4300 = vmatprep.subr.bf16.mxu1 %v4760_v49 }
 0x264   : > { %4279 = vmatpush3.bf16.msra.mxu0 %v4759_v48 }
 0x265   : > { %4301 = vmatpush3.bf16.msra.mxu1 %v4760_v49  ;;  %4280 = vmatprep.subr.bf16.mxu0 %v4761_v50 }
 0x266   : > { %4302 = vmatprep.subr.bf16.mxu1 %v4762_v51 }
 0x268   : > { %4281 = vmatpush3.bf16.msra.mxu0 %v4761_v50 }
 0x269   : > { %4303 = vmatpush3.bf16.msra.mxu1 %v4762_v51  ;;  %4282 = vmatprep.subr.bf16.mxu0 %v4763_v52 }
 0x26a   : > { %4304 = vmatprep.subr.bf16.mxu1 %v4764_v53 }
 0x26c   : > { %4283 = vmatpush3.bf16.msra.mxu0 %v4763_v52 }
 0x26d   : > { %4305 = vmatpush3.bf16.msra.mxu1 %v4764_v53  ;;  %4284 = vmatprep.subr.bf16.mxu0 %v4765_v54 }
 0x26e   : > { %4306 = vmatprep.subr.bf16.mxu1 %v4766_v55 }
 0x270   : > { %4285 = vmatpush3.bf16.msra.mxu0 %v4765_v54 }
 0x271   : > { %4307 = vmatpush3.bf16.msra.mxu1 %v4766_v55  ;;  %4286 = vmatprep.subr.bf16.mxu0 %v4767_v56  ;;  %v3823_v55 = vld [vmem:[#allocation14] ss:$0 sm:$0xff] }
 0x272   : > { %4332 = vmatprep.subr.bf16.mxu1 %v4770_v3 }
 0x274   : > { %4309 = vmatmul.mubr.bf16.vlgmr.msra.gmra.mrb[12].mxu1 %v1606_v31  ;;  %4287 = vmatpush3.bf16.msra.mxu0 %v4767_v56 }
 0x275   : > { %4312 = vmatprep.subr.bf16.mxu0 %v4768_v59  ;;  %4333 = vmatpush3.bf16.msra.mxu1 %v4770_v3 }
 0x276   : > { %4334 = vmatprep.subr.bf16.mxu1 %v4772_v60 }
 0x277   : > { %4289 = vmatmul.mubr.bf16.vlgmr.msra.gmra.mrb[12].mxu0 %v1467_v38 }
 0x278   : > { %4313 = vmatpush3.bf16.msra.mxu0 %v4768_v59 }
 0x279   : > { %4314 = vmatprep.subr.bf16.mxu0 %v4769_v62  ;;  %4335 = vmatpush3.bf16.msra.mxu1 %v4772_v60 }
 0x27a   : > { %4336 = vmatprep.subr.bf16.mxu1 %v4774_v7 }
 0x27c   : > { %4315 = vmatpush3.bf16.msra.mxu0 %v4769_v62 }
 0x27d   : > { %4316 = vmatprep.subr.bf16.mxu0 %v4771_v5  ;;  %4337 = vmatpush3.bf16.msra.mxu1 %v4774_v7 }
 0x27e   : > { %4338 = vmatprep.subr.bf16.mxu1 %v4776_v9 }
 0x280   : > { %4317 = vmatpush3.bf16.msra.mxu0 %v4771_v5 }
 0x281   : > { %4318 = vmatprep.subr.bf16.mxu0 %v4773_v6  ;;  %4339 = vmatpush3.bf16.msra.mxu1 %v4776_v9 }
 0x282   : > { %4340 = vmatprep.subr.bf16.mxu1 %v4778_v10 }
 0x284   : > { %4319 = vmatpush3.bf16.msra.mxu0 %v4773_v6 }
 0x285   : > { %4320 = vmatprep.subr.bf16.mxu0 %v4775_v8  ;;  %4341 = vmatpush3.bf16.msra.mxu1 %v4778_v10 }
 0x286   : > { %4342 = vmatprep.subr.bf16.mxu1 %v4780_v13 }
 0x288   : > { %4321 = vmatpush3.bf16.msra.mxu0 %v4775_v8 }
 0x289   : > { %4322 = vmatprep.subr.bf16.mxu0 %v4777_v61  ;;  %4343 = vmatpush3.bf16.msra.mxu1 %v4780_v13 }
 0x28a   : > { %4344 = vmatprep.subr.bf16.mxu1 %v4782_v15 }
 0x28c   : > { %4323 = vmatpush3.bf16.msra.mxu0 %v4777_v61 }
 0x28d   : > { %4324 = vmatprep.subr.bf16.mxu0 %v4779_v11  ;;  %4345 = vmatpush3.bf16.msra.mxu1 %v4782_v15 }
 0x28e   : > { %4346 = vmatprep.subr.bf16.mxu1 %v4788_v17 }
 0x290   : > { %4325 = vmatpush3.bf16.msra.mxu0 %v4779_v11 }
 0x291   : > { %4326 = vmatprep.subr.bf16.mxu0 %v4781_v14  ;;  %4347 = vmatpush3.bf16.msra.mxu1 %v4788_v17 }
 0x292   : > { %4372 = vmatprep.subr.bf16.mxu1 %v5787_v18 }
 0x294   : > { %4327 = vmatpush3.bf16.msra.mxu0 %v4781_v14 }
 0x295   : > { %4352 = vmatprep.subr.bf16.mxu0 %v5784_v16 }
 0x306   : > { %v4230_v19 = vpop.f32.mrb[4].mxu1 }
 0x307   : > { %v1154_v20 = vpop.f32.mrb[5].mxu1 }
 0x308   : > { %v4231_v21 = vpop.f32.mrb[6].mxu1 }
 0x309   : > { %v1157_v22 = vpop.f32.mrb[7].mxu1 }
 0x30a   : > { %v4210_v23 = vpop.f32.mrb[4].mxu0 }
 0x30b   : > { %v1163_v24 = vadd.f32 %v4230_v19, %v4210_v23  ;;  %v1049_v26 = vpop.f32.mrb[5].mxu0  ;;  %v1767_v23 = vld [vmem:[#allocation3] sm:$0x8] }
 0x30c   : > { %v1155_v27 = vadd.f32 %v1154_v20, %v1049_v26  ;;  %v4211_v28 = vpop.f32.mrb[6].mxu0 }
 0x30d   : > { %v1052_v29 = vpop.f32.mrb[7].mxu0 }
 0x30e   : > { %v1158_v30 = vadd.f32 %v1157_v22, %v1052_v29 }
 0x326   : > { %v4270_v31 = vpop.f32.mrb[8].mxu1 }
 0x327   : > { %v1418_v32 = vpop.f32.mrb[9].mxu1 }
 0x328   : > { %v4271_v33 = vpop.f32.mrb[10].mxu1 }
 0x329   : > { %v1421_v35 = vpop.f32.mrb[11].mxu1 }
 0x32a   : > { %v4250_v37 = vpop.f32.mrb[8].mxu0 }
 0x32b   : > { %v1296_v38 = vadd.f32 %v4250_v37, %v1163_v24  ;;  %v1280_v39 = vpop.f32.mrb[9].mxu0 }
 0x32c   : > { %v1294_v40 = vadd.f32 %v1280_v39, %v1155_v27  ;;  %v4251_v34 = vpop.f32.mrb[10].mxu0 }
 0x32d   : > { %v1283_v43 = vpop.f32.mrb[11].mxu0  ;;  %v1434_v44 = vadd.f32 %v4270_v31, %v1296_v38 }
 0x32e   : > { %v1295_v45 = vadd.f32 %v1283_v43, %v1158_v30  ;;  %v1432_v46 = vadd.f32 %v1418_v32, %v1294_v40  ;;  %v1772_v30 = vld [vmem:[#allocation3 + $0xc] sm:$0x7] }
 0x330   : > { %v1433_v47 = vadd.f32 %v1421_v35, %v1295_v45 }
 0x347   : > { %v4310_v48 = vpop.f32.mrb[12].mxu1 }
 0x348   : > { %v1692_v49 = vpop.f32.mrb[13].mxu1 }
 0x349   : > { %v4311_v50 = vpop.f32.mrb[14].mxu1 }
 0x34a   : > { %v1695_v51 = vpop.f32.mrb[15].mxu1  ;;  %v4290_v52 = vpop.f32.mrb[12].mxu0 }
 0x34b   : > { %v1569_v53 = vadd.f32 %v4290_v52, %v1434_v44  ;;  %v1553_v54 = vpop.f32.mrb[13].mxu0 }
 0x34c   : > { %v1567_v56 = vadd.f32 %v1553_v54, %v1432_v46  ;;  %v4291_v57 = vpop.f32.mrb[14].mxu0 }
 0x34d   : > { %v1708_v58 = vadd.f32 %v4310_v48, %v1569_v53  ;;  %v1556_v59 = vpop.f32.mrb[15].mxu0 }
 0x34e   : > { %v1706_v62 = vadd.f32 %v1692_v49, %v1567_v56  ;;  %v1568_v2 = vadd.f32 %v1556_v59, %v1433_v47 }
 0x34f   : > { %v1717_v3 = vadd.f32 %v3823_v55, %v1708_v58 }
 0x350   : > { %v1715_v4 = vadd.f32 %v3823_v55, %v1706_v62  ;;  %v1707_v5 = vadd.f32 %v1695_v51, %v1568_v2 }
 0x351   : > { %v1720_v60 = vmax.f32 %v1717_v3, 0.0  ;;  %v4791_v3 = vld [vmem:[#allocation16 + $0xd0] sm:$0xff]  }
 0x352   : > { %v1718_v6 = vmax.f32 %v1715_v4, 0.0  ;;  %v1716_v7 = vadd.f32 %v3823_v55, %v1707_v5  ;;  %v4789_v55 = vld [vmem:[#allocation16 + $0xc8] sm:$0xff]  }
 0x353   : > { %v1723_v8 = vmul.f32 %v1720_v60, %v5722_v0 }
 0x354   : > { %v1721_v9 = vmul.f32 %v1718_v6, %v5720_v63  ;;  %v1719_v61 = vmax.f32 %v1716_v7, 0.0  ;;  %v4792_v6 = vld [vmem:[#allocation16 + $0x88] sm:$0xff]   ;;  %v4793_v7 = vld [vmem:[#allocation16 + $0xd8] sm:$0xff]  }
 0x355   : > { %v3966_v10 = vpack.c.bf16 %v1723_v8, %v1723_v8  ;;  %v4795_v8 = vld [vmem:[#allocation16 + $0xe0] sm:$0xff]  }
 0x356   : > { %v3964_v11 = vpack.c.bf16 %v1721_v9, %v1721_v9  ;;  %v1722_v13 = vmul.f32 %v1719_v61, %v5728_v25  ;;  %v4796_v9 = vld [vmem:[#allocation16 + $0x98] sm:$0xff]  }
 0x357   : > { %v1754_v14 = vshll.u32 %v3966_v10, 16  ;;  %v1758_v15 = vshrl.u32 %v3966_v10, 16  ;;  %v4797_v10 = vld [vmem:[#allocation16 + $0xe8] sm:$0xff]  }
 0x358   : > { %v1735_v17 = vshll.u32 %v3964_v11, 16  ;;  %v1738_v19 = vshrl.u32 %v3964_v11, 16  ;;  %v3965_v20 = vpack.c.bf16 %v1722_v13, %v1722_v13 }
 0x359   : > { %v1756_v21 = vrot.slane %v1754_v14, 5  ;;  %v1760_v22 = vrot.slane %v1758_v15, 4  ;;  %v4798_v14 = vld [vmem:[#allocation16 + $0xa0] sm:$0xff]  }
 0x35a   : > { %v1737_v24 = vrot.slane %v1735_v17, 5  ;;  %v1740_v26 = vrot.slane %v1738_v19, 4  ;;  %v1744_v27 = vshll.u32 %v3965_v20, 16  ;;  %v1748_v28 = vshrl.u32 %v3965_v20, 16  ;;  %v4800_v20 = vld [vmem:[#allocation16 + $0xa8] sm:$0xff]  }
 0x35b   : > { %v1761_v29 = vor.u32 %v1760_v22, %v1756_v21 }
 0x35c   : > { %v1741_v31 = vor.u32 %v1740_v26, %v1737_v24  ;;  %v1768_v32 = vsel %vm5734_vm13, %v1737_v24, %v1767_v23  ;;  %v1746_v33 = vrot.slane %v1744_v27, 5  ;;  %v1750_v35 = vrot.slane %v1748_v28, 4  ;;  %v4802_v27 = vld [vmem:[#allocation16 + $0xb0] sm:$0xff]   ;;  %v4803_v28 = vld [vmem:[#allocation16 + $0x100] sm:$0xff]  }
 0x35d   : > { %v1762_v37 = vrot.slane %v1761_v29, 4  ;;  %1769 = vst [vmem:[#allocation3] sm:$0x8] %v1768_v32 }
 0x35e   : > { %v1742_v38 = vrot.slane %v1741_v31, 4  ;;  %v1751_v39 = vor.u32 %v1750_v35, %v1746_v33  ;;  %v4807_v35 = vld [vmem:[#allocation16 + $0x108] sm:$0xff]  }
 0x35f   : > { %v1773_v40 = vsel %vm5750_vm15, %v1762_v37, %v1772_v30 }
 0x360   : > { %1774 = vst [vmem:[#allocation3 + $0xc] sm:$0x7] %v1773_v40  ;;  %v1747_v34 = vsel %vm5744_vm14, %v1742_v38, %v1746_v33  ;;  %v1752_v43 = vrot.slane %v1751_v39, 4  ;;  %v4806_v33 = vld [vmem:[#allocation16 + $0xb8] sm:$0xff]   ;;  %v4808_v40 = vld [vmem:[#allocation16 + $0x140] sm:$0xff]  }
 0x361   : > { %1770 = vst [vmem:[#allocation3 + $0x4] sm:$0xf] %v1747_v34  ;;  %v4809_v34 = vld [vmem:[#allocation16 + $0x110] sm:$0xff]  }
 0x362   : > { %v1757_v44 = vsel %vm5744_vm14, %v1752_v43, %v1756_v21  ;;  %v4801_v21 = vld [vmem:[#allocation16 + $0xf8] sm:$0xff]  }
 0x363   : > { %1771 = vst [vmem:[#allocation3 + $0x8] sm:$0xf] %v1757_v44 }
 0x364   : > { %v1775_v45 = vld [vmem:[#allocation3] sm:$0x8] }
 0x367   : > { %v1778_v47 = vld [vmem:[#allocation3 + $0xc] sm:$0x7] }
 0x368   : > { %v1776_v46 = vld [vmem:[#allocation3 + $0x4] sm:$0xf]  ;;  %v5801_v54 = vcombine.low %v1778_v47, %v1778_v47  ;;  %v5811_v15 = vld [vmem:[#allocation3 + $0xc] sm:$0x3f]  }
 0x369   : > { %v3837_v48 = vcombine.low %v1775_v45, %v1776_v46  ;;  %v2263_v11 = vld [vmem:[#allocation3 + $0x4] sm:$0xc]  ;;  %v2304_v22 = vshrl.u32 %v5811_v15, 16  ;;  %v2307_v23 = vshll.u32 %v5811_v15, 16  ;;  %v2435_v44 = vrot.slane %v5811_v15, 3  ;;  %v5824_v15 = vld [vmem:[#allocation19 + $0x80] sm:$0xff]  }
 0x36a   : > { %v1777_v49 = vld [vmem:[#allocation3 + $0x8] sm:$0xf]  ;;  %v2413_v37 = vld [vmem:[#allocation3 + $0x4] sm:$0x8] }
 0x36b   : > { %v3827_v50 = vcombine.low %v1776_v46, %v1777_v49  ;;  %v3838_v51 = vcombine.low %v1777_v49, %v1778_v47  ;;  %v1923_v52 = vshrl.u32 %v3837_v48, 16  ;;  %v1926_v53 = vshll.u32 %v3837_v48, 16  ;;  %v2264_v61 = vld [vmem:[#allocation3 + $0x8] sm:$0xf]  ;;  %v4811_v45 = vld [vmem:[#allocation16 + $0x148] sm:$0xff]   ;;  %v4812_v46 = vld [vmem:[#allocation16 + $0x118] sm:$0xff]  }
 0x36c   : > { %v3863_v13 = vcombine.low %v2263_v11, %v2264_v61  ;;  %v2306_v29 = vrot.slane %v2304_v22, 2  ;;  %v2309_v30 = vrot.slane %v2307_v23, 3  ;;  %v3873_v38 = vcombine.low %v2413_v37, %v2264_v61  ;;  %v4813_v48 = vld [vmem:[#allocation16 + $0x150] sm:$0xff]   ;;  %v4814_v49 = vld [vmem:[#allocation16 + $0x120] sm:$0xff]  }
 0x36d   : > { %4328 = vmatprep.mubr.bf16.mxu0 %v3827_v50  ;;  %v1931_v56 = vshrl.u32 %v3838_v51, 16  ;;  %v1934_v57 = vshll.u32 %v3838_v51, 16  ;;  %v1925_v58 = vrot.slane %v1923_v52, 3  ;;  %v1928_v59 = vrot.slane %v1926_v53, 4  ;;  %v4816_v51 = vld [vmem:[#allocation16 + $0x128] sm:$0xff]   ;;  %v4817_v52 = vld [vmem:[#allocation16 + $0x160] sm:$0xff]  }
 0x36e   : > { %4329 = vmatmul.mubr.bf16.vlgmr.msra.gmra.mrb[16].mxu0 %v5801_v54  ;;  %v2296_v17 = vshrl.u32 %v3863_v13, 16  ;;  %v2299_v19 = vshll.u32 %v3863_v13, 16  ;;  %v2310_v32 = vor.u32 %v2309_v30, %v2306_v29  ;;  %v2434_v43 = vrot.slane %v3873_v38, 3  ;;  %v4818_v53 = vld [vmem:[#allocation16 + $0x130] sm:$0xff]   ;;  %v5834_v29 = vld [vmem:[#allocation17] ss:$0 sm:$0xff] }
 0x36f   : > { %4353 = vmatpush3.bf16.msra.mxu0 %v5784_v16  ;;  %4368 = vmatprep.mubr.bf16.mxu0 %v3827_v50  ;;  %v1933_v62 = vrot.slane %v1931_v56, 3  ;;  %v1936_v2 = vrot.slane %v1934_v57, 4  ;;  %v1929_v4 = vor.u32 %v1928_v59, %v1925_v58  ;;  %v4794_v16 = vld [vmem:[#allocation16 + $0x90] sm:$0xff]   ;;  %v4815_v50 = vld [vmem:[#allocation16 + $0x158] sm:$0xff]   ;;  %v525_v58 = vld [vmem:[#allocation4 + $0xc] sm:$0xc] }
 0x370   : > { %4354 = vmatprep.subr.bf16.mxu0 %v4789_v55  ;;  %v2298_v24 = vrot.slane %v2296_v17, 2  ;;  %v2301_v26 = vrot.slane %v2299_v19, 3  ;;  %v2436_v47 = vsel %vm1066_vm1, %v2434_v43, %v2435_v44  ;;  %v4821_v56 = vld [vmem:[#allocation16 + $0x170] sm:$0xff]   ;;  %v4822_v57 = vld [vmem:[#allocation16 + $0x178] sm:$0xff]   ;;  %v526_v59 = vsel %vm5706_vm7, 0, %v525_v58  ;;  %v5827_v19 = vld [vmem:[#allocation19 + $0xc0] sm:$0xff]  }
 0x371   : > { %v5805_v5 = vor.u32 %v1936_v2, %v1933_v62  ;;  %527 = vst [vmem:[#allocation4 + $0xc] sm:$0xc] %v526_v59  ;;  %v4823_v62 = vld [vmem:[#allocation19 + $0x40] sm:$0xff]   ;;  %v4824_v2 = vld [vmem:[#allocation19 + $0x48] sm:$0xff]   ;;  %v4834_v11 = vld [vmem:[#allocation19 + $0x70] sm:$0xff]  }
 0x372   : > { %v2302_v31 = vor.u32 %v2301_v26, %v2298_v24  ;;  %v4832_v61 = vld [vmem:[#allocation19 + $0x68] sm:$0xff]   ;;  %v4843_v17 = vld [vmem:[#allocation19 + $0x38] sm:$0xff]  }
 0x373   : > { %4355 = vmatpush3.bf16.msra.mxu0 %v4789_v55  ;;  %v1938_v60 = vsel %vm580_vm0, %v1929_v4, %v5805_v5  ;;  %v4820_v55 = vld [vmem:[#allocation16 + $0x138] sm:$0xff]   ;;  %v4825_v4 = vld [vmem:[#allocation19] sm:$0xff]   ;;  %v4835_v13 = vld [vmem:[#allocation19 + $0x28] sm:$0xff]  }
 0x374   : > { %4348 = vmatprep.mubr.bf16.mxu1 %v1938_v60  ;;  %4356 = vmatprep.subr.bf16.mxu0 %v4791_v3  ;;  %v2311_v39 = vsel %vm2294_vm3, %v2302_v31, %v2310_v32  ;;  %v538_v22 = vld [vmem:[#allocation4 + $0x14] sm:$0xf] }
 0x375   : > { %4349 = vmatmul.mubr.bf16.vlgmr.msra.gmra.mrb[16].mxu1 %v5805_v5  ;;  %v539_v23 = vsel %vm5698_vm4, 0, %v538_v22 }
 0x376   : > { %4373 = vmatpush3.bf16.msra.mxu1 %v5787_v18  ;;  %4388 = vmatprep.mubr.bf16.mxu1 %v1938_v60  ;;  %v4799_v18 = vld [vmem:[#allocation16 + $0xf0] sm:$0xff]   ;;  %540 = vst [vmem:[#allocation4 + $0x14] sm:$0xf] %v539_v23 }
 0x377   : > { %4357 = vmatpush3.bf16.msra.mxu0 %v4791_v3  ;;  %4374 = vmatprep.subr.bf16.mxu1 %v4792_v6  ;;  %v522_v3 = vld [vmem:[#allocation4] sm:$0xf]  ;;  %v4826_v60 = vld [vmem:[#allocation19 + $0x50] sm:$0xff]  }
 0x378   : > { %4358 = vmatprep.subr.bf16.mxu0 %v4793_v7 }
 0x37a   : > { %4375 = vmatpush3.bf16.msra.mxu1 %v4792_v6  ;;  %v4827_v6 = vld [vmem:[#allocation19 + $0x8] sm:$0xff]  }
 0x37b   : > { %4359 = vmatpush3.bf16.msra.mxu0 %v4793_v7  ;;  %4376 = vmatprep.subr.bf16.mxu1 %v4794_v16  ;;  %v4828_v7 = vld [vmem:[#allocation19 + $0x58] sm:$0xff]  }
 0x37c   : > { %4360 = vmatprep.subr.bf16.mxu0 %v4795_v8 }
 0x37e   : > { %4377 = vmatpush3.bf16.msra.mxu1 %v4794_v16  ;;  %v4829_v16 = vld [vmem:[#allocation19 + $0x10] sm:$0xff]  }
 0x37f   : > { %4361 = vmatpush3.bf16.msra.mxu0 %v4795_v8  ;;  %4378 = vmatprep.subr.bf16.mxu1 %v4796_v9  ;;  %v4830_v8 = vld [vmem:[#allocation19 + $0x60] sm:$0xff]  }
 0x380   : > { %4362 = vmatprep.subr.bf16.mxu0 %v4797_v10 }
 0x382   : > { %4379 = vmatpush3.bf16.msra.mxu1 %v4796_v9  ;;  %v4831_v9 = vld [vmem:[#allocation19 + $0x18] sm:$0xff]  }
 0x383   : > { %4363 = vmatpush3.bf16.msra.mxu0 %v4797_v10  ;;  %4380 = vmatprep.subr.bf16.mxu1 %v4798_v14  ;;  %v4833_v10 = vld [vmem:[#allocation19 + $0x20] sm:$0xff]  }
 0x384   : > { %4364 = vmatprep.subr.bf16.mxu0 %v4799_v18 }
 0x386   : > { %4381 = vmatpush3.bf16.msra.mxu1 %v4798_v14  ;;  %v4836_v14 = vld [vmem:[#allocation19 + $0x78] sm:$0xff]  }
 0x387   : > { %4365 = vmatpush3.bf16.msra.mxu0 %v4799_v18  ;;  %4382 = vmatprep.subr.bf16.mxu1 %v4800_v20  ;;  %v4837_v18 = vld [vmem:[#allocation19 + $0x30] sm:$0xff]  }
 0x388   : > { %4366 = vmatprep.subr.bf16.mxu0 %v4801_v21 }
 0x38a   : > { %4383 = vmatpush3.bf16.msra.mxu1 %v4800_v20  ;;  %v541_v20 = vld [vmem:[#allocation4 + $0x20] sm:$0xc] }
 0x38b   : > { %4367 = vmatpush3.bf16.msra.mxu0 %v4801_v21  ;;  %4384 = vmatprep.subr.bf16.mxu1 %v4802_v27  ;;  %v542_v21 = vsel %vm5706_vm7, 0, %v541_v20 }
 0x38c   : > { %4392 = vmatprep.subr.bf16.mxu0 %v4803_v28  ;;  %543 = vst [vmem:[#allocation4 + $0x20] sm:$0xc] %v542_v21 }
 0x38e   : > { %4369 = vmatmul.mubr.bf16.vlgmr.msra.gmra.mrb[20].mxu0 %v5801_v54  ;;  %4385 = vmatpush3.bf16.msra.mxu1 %v4802_v27  ;;  %v4819_v54 = vld [vmem:[#allocation16 + $0x168] sm:$0xff]  }
 0x38f   : > { %4393 = vmatpush3.bf16.msra.mxu0 %v4803_v28  ;;  %4408 = vmatprep.mubr.bf16.mxu0 %v2311_v39 }
 0x390   : > { %4386 = vmatprep.subr.bf16.mxu1 %v4806_v33  ;;  %4394 = vmatprep.subr.bf16.mxu0 %v4807_v35 }
 0x392   : > { %4387 = vmatpush3.bf16.msra.mxu1 %v4806_v33 }
 0x393   : > { %4395 = vmatpush3.bf16.msra.mxu0 %v4807_v35  ;;  %4412 = vmatprep.subr.bf16.mxu1 %v4808_v40 }
 0x394   : > { %4396 = vmatprep.subr.bf16.mxu0 %v4809_v34 }
 0x395   : > { %4389 = vmatmul.mubr.bf16.vlgmr.msra.gmra.mrb[20].mxu1 %v5805_v5  ;;  %v523_v5 = vsel %vm5698_vm4, 0, %v522_v3  ;;  %v2601_v3 = vld [vmem:[#allocation4 + $0xc] sm:$0x7] }
 0x396   : > { %4413 = vmatpush3.bf16.msra.mxu1 %v4808_v40  ;;  %4428 = vmatprep.mubr.bf16.mxu1 %v2436_v47  ;;  %524 = vst [vmem:[#allocation4] sm:$0xf] %v523_v5 }
 0x397   : > { %4397 = vmatpush3.bf16.msra.mxu0 %v4809_v34  ;;  %4414 = vmatprep.subr.bf16.mxu1 %v4811_v45 }
 0x398   : > { %4398 = vmatprep.subr.bf16.mxu0 %v4812_v46 }
 0x39a   : > { %4415 = vmatpush3.bf16.msra.mxu1 %v4811_v45 }
 0x39b   : > { %4399 = vmatpush3.bf16.msra.mxu0 %v4812_v46  ;;  %4416 = vmatprep.subr.bf16.mxu1 %v4813_v48 }
 0x39c   : > { %4400 = vmatprep.subr.bf16.mxu0 %v4814_v49 }
 0x39e   : > { %4417 = vmatpush3.bf16.msra.mxu1 %v4813_v48 }
 0x39f   : > { %4401 = vmatpush3.bf16.msra.mxu0 %v4814_v49  ;;  %4418 = vmatprep.subr.bf16.mxu1 %v4815_v50 }
 0x3a0   : > { %4402 = vmatprep.subr.bf16.mxu0 %v4816_v51 }
 0x3a2   : > { %4419 = vmatpush3.bf16.msra.mxu1 %v4815_v50 }
 0x3a3   : > { %4403 = vmatpush3.bf16.msra.mxu0 %v4816_v51  ;;  %4420 = vmatprep.subr.bf16.mxu1 %v4817_v52 }
 0x3a4   : > { %4404 = vmatprep.subr.bf16.mxu0 %v4818_v53 }
 0x3a6   : > { %4421 = vmatpush3.bf16.msra.mxu1 %v4817_v52 }
 0x3a7   : > { %4405 = vmatpush3.bf16.msra.mxu0 %v4818_v53  ;;  %4422 = vmatprep.subr.bf16.mxu1 %v4819_v54 }
 0x3a8   : > { %4406 = vmatprep.subr.bf16.mxu0 %v4820_v55 }
 0x3aa   : > { %4423 = vmatpush3.bf16.msra.mxu1 %v4819_v54 }
 0x3ab   : > { %4407 = vmatpush3.bf16.msra.mxu0 %v4820_v55  ;;  %4424 = vmatprep.subr.bf16.mxu1 %v4821_v56 }
 0x3ac   : > { %4432 = vmatprep.subr.bf16.mxu0 %v4823_v62 }
 0x3ae   : > { %4409 = vmatmul.mubr.bf16.vlgmr.msra.gmra.mrb[24].mxu0 %v2310_v32  ;;  %4425 = vmatpush3.bf16.msra.mxu1 %v4821_v56  ;;  %v2596_v56 = vld [vmem:[#allocation4] sm:$0x8] }
 0x3af   : > { %4426 = vmatprep.subr.bf16.mxu1 %v4822_v57  ;;  %4433 = vmatpush3.bf16.msra.mxu0 %v4823_v62 }
 0x3b0   : > { %4434 = vmatprep.subr.bf16.mxu0 %v4824_v2 }
 0x3b2   : > { %4427 = vmatpush3.bf16.msra.mxu1 %v4822_v57 }
 0x3b3   : > { %4435 = vmatpush3.bf16.msra.mxu0 %v4824_v2  ;;  %4452 = vmatprep.subr.bf16.mxu1 %v4825_v4 }
 0x3b4   : > { %4436 = vmatprep.subr.bf16.mxu0 %v4826_v60 }
 0x3b5   : > { %4429 = vmatmul.mubr.bf16.vlgmr.msra.gmra.mrb[24].mxu1 %v2435_v44 }
 0x3b6   : > { %4453 = vmatpush3.bf16.msra.mxu1 %v4825_v4 }
 0x3b7   : > { %4437 = vmatpush3.bf16.msra.mxu0 %v4826_v60  ;;  %4454 = vmatprep.subr.bf16.mxu1 %v4827_v6 }
 0x3b8   : > { %4438 = vmatprep.subr.bf16.mxu0 %v4828_v7 }
 0x3ba   : > { %4455 = vmatpush3.bf16.msra.mxu1 %v4827_v6 }
 0x3bb   : > { %4439 = vmatpush3.bf16.msra.mxu0 %v4828_v7  ;;  %4456 = vmatprep.subr.bf16.mxu1 %v4829_v16 }
 0x3bc   : > { %4440 = vmatprep.subr.bf16.mxu0 %v4830_v8 }
 0x3be   : > { %4457 = vmatpush3.bf16.msra.mxu1 %v4829_v16 }
 0x3bf   : > { %4441 = vmatpush3.bf16.msra.mxu0 %v4830_v8  ;;  %4458 = vmatprep.subr.bf16.mxu1 %v4831_v9 }
 0x3c0   : > { %4442 = vmatprep.subr.bf16.mxu0 %v4832_v61 }
 0x3c2   : > { %4459 = vmatpush3.bf16.msra.mxu1 %v4831_v9 }
 0x3c3   : > { %4443 = vmatpush3.bf16.msra.mxu0 %v4832_v61  ;;  %4460 = vmatprep.subr.bf16.mxu1 %v4833_v10 }
 0x3c4   : > { %4444 = vmatprep.subr.bf16.mxu0 %v4834_v11 }
 0x3c6   : > { %4461 = vmatpush3.bf16.msra.mxu1 %v4833_v10 }
 0x3c7   : > { %4445 = vmatpush3.bf16.msra.mxu0 %v4834_v11  ;;  %4462 = vmatprep.subr.bf16.mxu1 %v4835_v13 }
 0x3c8   : > { %4446 = vmatprep.subr.bf16.mxu0 %v4836_v14 }
 0x3ca   : > { %4463 = vmatpush3.bf16.msra.mxu1 %v4835_v13 }
 0x3cb   : > { %4447 = vmatpush3.bf16.msra.mxu0 %v4836_v14  ;;  %4464 = vmatprep.subr.bf16.mxu1 %v4837_v18 }
 0x3cc   : > { %4472 = vmatprep.subr.bf16.mxu0 %v5824_v15 }
 0x3ce   : > { %4465 = vmatpush3.bf16.msra.mxu1 %v4837_v18 }
 0x3cf   : > { %4466 = vmatprep.subr.bf16.mxu1 %v4843_v17 }
 0x3d2   : > { %4467 = vmatpush3.bf16.msra.mxu1 %v4843_v17 }
 0x3d3   : > { %4492 = vmatprep.subr.bf16.mxu1 %v5827_v19 }
 0x441   : > { %v4330_v24 = vpop.f32.mrb[16].mxu0 }
 0x442   : > { %v1904_v26 = vpop.f32.mrb[17].mxu0 }
 0x443   : > { %v4331_v27 = vpop.f32.mrb[18].mxu0 }
 0x444   : > { %v1907_v28 = vpop.f32.mrb[19].mxu0 }
 0x448   : > { %v4350_v30 = vpop.f32.mrb[16].mxu1 }
 0x449   : > { %v2032_v31 = vadd.f32 %v4350_v30, %v4330_v24  ;;  %v2023_v32 = vpop.f32.mrb[17].mxu1 }
 0x44a   : > { %v2024_v33 = vadd.f32 %v2023_v32, %v1904_v26  ;;  %v4351_v35 = vpop.f32.mrb[18].mxu1 }
 0x44b   : > { %v2546_v42 = vadd.f32 %v5834_v29, %v2032_v31  ;;  %v2026_v37 = vpop.f32.mrb[19].mxu1 }
 0x44c   : > { %v2544_v38 = vadd.f32 %v5834_v29, %v2024_v33  ;;  %v2027_v39 = vadd.f32 %v2026_v37, %v1907_v28 }
 0x44d   : > { %v2549_v36 = vmax.f32 %v2546_v42, 0.0 }
 0x44e   : > { %v2547_v40 = vmax.f32 %v2544_v38, 0.0  ;;  %v2545_v34 = vadd.f32 %v5834_v29, %v2027_v39  ;;  %v4844_v38 = vld [vmem:[#allocation19 + $0x88] sm:$0xff]  }
 0x44f   : > { %v2552_v43 = vmul.f32 %v2549_v36, %v5722_v0 }
 0x450   : > { %v2550_v44 = vmul.f32 %v2547_v40, %v5720_v63  ;;  %v2548_v45 = vmax.f32 %v2545_v34, 0.0 }
 0x451   : > { %v3969_v46 = vpack.c.bf16 %v2552_v43, %v2552_v43 }
 0x452   : > { %v3967_v47 = vpack.c.bf16 %v2550_v44, %v2550_v44  ;;  %v2551_v48 = vmul.f32 %v2548_v45, %v5728_v25 }
 0x453   : > { %v2583_v49 = vshll.u32 %v3969_v46, 16  ;;  %v2587_v50 = vshrl.u32 %v3969_v46, 16 }
 0x454   : > { %v2564_v51 = vshll.u32 %v3967_v47, 16  ;;  %v2567_v52 = vshrl.u32 %v3967_v47, 16  ;;  %v3968_v53 = vpack.c.bf16 %v2551_v48, %v2551_v48 }
 0x455   : > { %v2585_v54 = vrot.slane %v2583_v49, 5  ;;  %v2589_v55 = vrot.slane %v2587_v50, 4 }
 0x456   : > { %v2566_v57 = vrot.slane %v2564_v51, 5  ;;  %v2569_v58 = vrot.slane %v2567_v52, 4  ;;  %v2573_v59 = vshll.u32 %v3968_v53, 16  ;;  %v2577_v62 = vshrl.u32 %v3968_v53, 16 }
 0x457   : > { %v2590_v2 = vor.u32 %v2589_v55, %v2585_v54 }
 0x458   : > { %v2570_v4 = vor.u32 %v2569_v58, %v2566_v57  ;;  %v2597_v5 = vsel %vm5734_vm13, %v2566_v57, %v2596_v56  ;;  %v2575_v60 = vrot.slane %v2573_v59, 5  ;;  %v2579_v6 = vrot.slane %v2577_v62, 4 }
 0x459   : > { %v2591_v7 = vrot.slane %v2590_v2, 4  ;;  %2598 = vst [vmem:[#allocation4] sm:$0x8] %v2597_v5  ;;  %v4848_v2 = vld [vmem:[#allocation19 + $0x90] sm:$0xff]  }
 0x45a   : > { %v2571_v16 = vrot.slane %v2570_v4, 4  ;;  %v2580_v8 = vor.u32 %v2579_v6, %v2575_v60 }
 0x45b   : > { %v2602_v9 = vsel %vm5750_vm15, %v2591_v7, %v2601_v3 }
 0x45c   : > { %2603 = vst [vmem:[#allocation4 + $0xc] sm:$0x7] %v2602_v9  ;;  %v2576_v61 = vsel %vm5744_vm14, %v2571_v16, %v2575_v60  ;;  %v2581_v10 = vrot.slane %v2580_v8, 4  ;;  %v4851_v9 = vld [vmem:[#allocation19 + $0x98] sm:$0xff]  }
 0x45d   : > { %2599 = vst [vmem:[#allocation4 + $0x4] sm:$0xf] %v2576_v61 }
 0x45e   : > { %v2586_v11 = vsel %vm5744_vm14, %v2581_v10, %v2585_v54  ;;  %v4852_v10 = vld [vmem:[#allocation19 + $0xd0] sm:$0xff]  }
 0x45f   : > { %2600 = vst [vmem:[#allocation4 + $0x8] sm:$0xf] %v2586_v11  ;;  %v4853_v11 = vld [vmem:[#allocation19 + $0xa0] sm:$0xff]  }
 0x460   : > { %v2664_v21 = vld [vmem:[#allocation4] sm:$0x8] }
 0x461   : > { %v4370_v13 = vpop.f32.mrb[20].mxu0 }
 0x462   : > { %v2153_v14 = vpop.f32.mrb[21].mxu0 }
 0x463   : > { %v4371_v18 = vpop.f32.mrb[22].mxu0  ;;  %v2667_v17 = vld [vmem:[#allocation4 + $0xc] sm:$0x7] }
 0x464   : > { %v2156_v20 = vpop.f32.mrb[23].mxu0  ;;  %v2665_v22 = vld [vmem:[#allocation4 + $0x4] sm:$0xf]  ;;  %v5850_v24 = vld [vmem:[#allocation4 + $0xc] sm:$0x3f]   ;;  %v3890_v27 = vcombine.low %v2667_v17, %v2667_v17 }
 0x465   : > { %v3899_v23 = vcombine.low %v2664_v21, %v2665_v22  ;;  %v2926_v35 = vld [vmem:[#allocation4 + $0x4] sm:$0xc]  ;;  %v2966_v36 = vshrl.u32 %v5850_v24, 16  ;;  %v2969_v40 = vshll.u32 %v5850_v24, 16  ;;  %v3097_v16 = vrot.slane %v5850_v24, 3 }
 0x466   : > { %v2666_v26 = vld [vmem:[#allocation4 + $0x8] sm:$0xf]  ;;  %v3075_v42 = vld [vmem:[#allocation4 + $0x4] sm:$0x8] }
 0x467   : > { %v2927_v28 = vld [vmem:[#allocation4 + $0x8] sm:$0xf]  ;;  %v3889_v30 = vcombine.low %v2665_v22, %v2666_v26  ;;  %v3900_v31 = vcombine.low %v2666_v26, %v2667_v17  ;;  %v2812_v32 = vshrl.u32 %v3899_v23, 16  ;;  %v2815_v33 = vshll.u32 %v3899_v23, 16  ;;  %v4857_v17 = vld [vmem:[#allocation19 + $0xb0] sm:$0xff]  }
 0x468   : > { %v4390_v37 = vpop.f32.mrb[20].mxu1  ;;  %v3909_v39 = vcombine.low %v2926_v35, %v2927_v28  ;;  %v3919_v34 = vcombine.low %v3075_v42, %v2927_v28  ;;  %v2968_v56 = vrot.slane %v2966_v36, 2  ;;  %v2971_v57 = vrot.slane %v2969_v40, 3  ;;  %v4856_v18 = vld [vmem:[#allocation19 + $0xe0] sm:$0xff]   ;;  %v4860_v28 = vld [vmem:[#allocation19 + $0xf0] sm:$0xff]   ;;  %v4864_v42 = vld [vmem:[#allocation19 + $0x108] sm:$0xff]  }
 0x469   : > { %v5854_v43 = vadd.f32 %v4390_v37, %v4370_v13  ;;  %v2249_v44 = vpop.f32.mrb[21].mxu1  ;;  %4448 = vmatprep.mubr.bf16.mxu0 %v3889_v30  ;;  %v2820_v45 = vshrl.u32 %v3900_v31, 16  ;;  %v2823_v46 = vshll.u32 %v3900_v31, 16  ;;  %v2814_v47 = vrot.slane %v2812_v32, 3  ;;  %v4854_v13 = vld [vmem:[#allocation19 + $0xd8] sm:$0xff]   ;;  %v4862_v31 = vld [vmem:[#allocation19 + $0x100] sm:$0xff]  }
 0x46a   : > { %v2250_v48 = vadd.f32 %v2249_v44, %v2153_v14  ;;  %v4391_v49 = vpop.f32.mrb[22].mxu1  ;;  %4449 = vmatmul.mubr.bf16.vlgmr.msra.gmra.mrb[28].mxu0 %v3890_v27  ;;  %v2817_v50 = vrot.slane %v2815_v33, 4  ;;  %v2958_v51 = vshrl.u32 %v3909_v39, 16  ;;  %v2961_v52 = vshll.u32 %v3909_v39, 16  ;;  %v4855_v14 = vld [vmem:[#allocation19 + $0xa8] sm:$0xff]   ;;  %v4861_v33 = vld [vmem:[#allocation19 + $0xf8] sm:$0xff]  }
 0x46b   : > { %v2252_v53 = vpop.f32.mrb[23].mxu1  ;;  %4473 = vmatpush3.bf16.msra.mxu0 %v5824_v15  ;;  %v2822_v54 = vrot.slane %v2820_v45, 3  ;;  %v2825_v55 = vrot.slane %v2823_v46, 4  ;;  %v3096_v5 = vrot.slane %v3919_v34, 3  ;;  %v2972_v6 = vor.u32 %v2971_v57, %v2968_v56  ;;  %v4850_v15 = vld [vmem:[#allocation19 + $0xc8] sm:$0xff]   ;;  %v4866_v46 = vld [vmem:[#allocation19 + $0x110] sm:$0xff]  }
 0x46c   : > { %v2253_v58 = vadd.f32 %v2252_v53, %v2156_v20  ;;  %4474 = vmatprep.subr.bf16.mxu0 %v4844_v38  ;;  %v2960_v59 = vrot.slane %v2958_v51, 2  ;;  %v2963_v62 = vrot.slane %v2961_v52, 3  ;;  %v2818_v3 = vor.u32 %v2817_v50, %v2814_v47  ;;  %v4859_v20 = vld [vmem:[#allocation19 + $0xb8] sm:$0xff]   ;;  %v4865_v51 = vld [vmem:[#allocation19 + $0x148] sm:$0xff]  }
 0x46d   : > { %v2826_v4 = vor.u32 %v2825_v55, %v2822_v54  ;;  %v3098_v61 = vsel %vm1066_vm1, %v3096_v5, %v3097_v16  ;;  %v4868_v54 = vld [vmem:[#allocation19 + $0x118] sm:$0xff]   ;;  %v2656_v5 = vld [vmem:[#allocation4 + $0x14] sm:$0x8] }
 0x46e   : > { %v2964_v60 = vor.u32 %v2963_v62, %v2960_v59 }
 0x46f   : > { %4475 = vmatpush3.bf16.msra.mxu0 %v4844_v38  ;;  %v2827_v7 = vsel %vm580_vm0, %v2818_v3, %v2826_v4 }
 0x470   : > { %4468 = vmatprep.mubr.bf16.mxu1 %v2827_v7  ;;  %v2973_v8 = vsel %vm2294_vm3, %v2964_v60, %v2972_v6  ;;  %4476 = vmatprep.subr.bf16.mxu0 %v4848_v2 }
 0x471   : > { %4488 = vmatprep.mubr.bf16.mxu0 %v2973_v8  ;;  %4469 = vmatmul.mubr.bf16.vlgmr.msra.gmra.mrb[28].mxu1 %v2826_v4 }
 0x472   : > { %4493 = vmatpush3.bf16.msra.mxu1 %v5827_v19  ;;  %4508 = vmatprep.mubr.bf16.mxu1 %v3098_v61  ;;  %v4858_v19 = vld [vmem:[#allocation19 + $0xe8] sm:$0xff]  }
 0x473   : > { %4477 = vmatpush3.bf16.msra.mxu0 %v4848_v2  ;;  %4494 = vmatprep.subr.bf16.mxu1 %v4850_v15 }
 0x474   : > { %4478 = vmatprep.subr.bf16.mxu0 %v4851_v9 }
 0x476   : > { %4495 = vmatpush3.bf16.msra.mxu1 %v4850_v15  ;;  %v2661_v15 = vld [vmem:[#allocation4 + $0x20] sm:$0x7] }
 0x477   : > { %4479 = vmatpush3.bf16.msra.mxu0 %v4851_v9  ;;  %4496 = vmatprep.subr.bf16.mxu1 %v4852_v10 }
 0x478   : > { %4480 = vmatprep.subr.bf16.mxu0 %v4853_v11 }
 0x47a   : > { %4497 = vmatpush3.bf16.msra.mxu1 %v4852_v10 }
 0x47b   : > { %4481 = vmatpush3.bf16.msra.mxu0 %v4853_v11  ;;  %4498 = vmatprep.subr.bf16.mxu1 %v4854_v13  ;;  %v4872_v11 = vld [vmem:[#allocation19 + $0x128] sm:$0xff]  }
 0x47c   : > { %4482 = vmatprep.subr.bf16.mxu0 %v4855_v14 }
 0x47e   : > { %4499 = vmatpush3.bf16.msra.mxu1 %v4854_v13 }
 0x47f   : > { %4483 = vmatpush3.bf16.msra.mxu0 %v4855_v14  ;;  %4500 = vmatprep.subr.bf16.mxu1 %v4856_v18 }
 0x480   : > { %4484 = vmatprep.subr.bf16.mxu0 %v4857_v17 }
 0x481   : > { %v4410_v21 = vpop.f32.mrb[24].mxu0 }
 0x482   : > { %v2412_v22 = vadd.f32 %v4410_v21, %v5854_v43  ;;  %v2396_v23 = vpop.f32.mrb[25].mxu0  ;;  %4501 = vmatpush3.bf16.msra.mxu1 %v4856_v18  ;;  %v4863_v43 = vld [vmem:[#allocation19 + $0x140] sm:$0xff]  }
 0x483   : > { %v2410_v26 = vadd.f32 %v2396_v23, %v2250_v48  ;;  %v4411_v27 = vpop.f32.mrb[26].mxu0  ;;  %4485 = vmatpush3.bf16.msra.mxu0 %v4857_v17  ;;  %4502 = vmatprep.subr.bf16.mxu1 %v4858_v19 }
 0x484   : > { %v2399_v30 = vpop.f32.mrb[27].mxu0  ;;  %4486 = vmatprep.subr.bf16.mxu0 %v4859_v20  ;;  %v4879_v27 = vld [vmem:[#allocation19 + $0x138] sm:$0xff]  }
 0x485   : > { %v2411_v32 = vadd.f32 %v2399_v30, %v2253_v58 }
 0x486   : > { %4503 = vmatpush3.bf16.msra.mxu1 %v4858_v19  ;;  %v4871_v19 = vld [vmem:[#allocation19 + $0x160] sm:$0xff]  }
 0x487   : > { %4487 = vmatpush3.bf16.msra.mxu0 %v4859_v20  ;;  %4504 = vmatprep.subr.bf16.mxu1 %v4860_v28 }
 0x488   : > { %v4430_v35 = vpop.f32.mrb[24].mxu1  ;;  %4512 = vmatprep.subr.bf16.mxu0 %v4862_v31 }
 0x489   : > { %v2537_v37 = vadd.f32 %v4430_v35, %v2412_v22  ;;  %v2521_v38 = vpop.f32.mrb[25].mxu1  ;;  %v4874_v22 = vld [vmem:[#allocation19 + $0x130] sm:$0xff]  }
 0x48a   : > { %v2535_v39 = vadd.f32 %v2521_v38, %v2410_v26  ;;  %v4431_v36 = vpop.f32.mrb[26].mxu1  ;;  %4489 = vmatmul.mubr.bf16.vlgmr.msra.gmra.mrb[32].mxu0 %v2972_v6  ;;  %4505 = vmatpush3.bf16.msra.mxu1 %v4860_v28  ;;  %v4873_v26 = vld [vmem:[#allocation19 + $0x168] sm:$0xff]   ;;  %v4875_v28 = vld [vmem:[#allocation19 + $0x170] sm:$0xff]  }
 0x48b   : > { %v2606_v40 = vadd.f32 %v5834_v29, %v2537_v37  ;;  %v2524_v34 = vpop.f32.mrb[27].mxu1  ;;  %4506 = vmatprep.subr.bf16.mxu1 %v4861_v33  ;;  %4513 = vmatpush3.bf16.msra.mxu0 %v4862_v31  ;;  %v4880_v36 = vld [vmem:[#allocation19 + $0x178] sm:$0xff]  }
 0x48c   : > { %v2604_v44 = vadd.f32 %v5834_v29, %v2535_v39  ;;  %v2536_v45 = vadd.f32 %v2524_v34, %v2411_v32  ;;  %4514 = vmatprep.subr.bf16.mxu0 %v4864_v42 }
 0x48d   : > { %v2609_v47 = vmax.f32 %v2606_v40, 0.0 }
 0x48e   : > { %v2607_v48 = vmax.f32 %v2604_v44, 0.0  ;;  %v2605_v49 = vadd.f32 %v5834_v29, %v2536_v45  ;;  %4507 = vmatpush3.bf16.msra.mxu1 %v4861_v33 }
 0x48f   : > { %v2612_v50 = vmul.f32 %v2609_v47, %v5722_v0  ;;  %4532 = vmatprep.subr.bf16.mxu1 %v4863_v43  ;;  %4515 = vmatpush3.bf16.msra.mxu0 %v4864_v42  ;;  %v4867_v0 = vld [vmem:[#allocation19 + $0x150] sm:$0xff]  }
 0x490   : > { %v2610_v52 = vmul.f32 %v2607_v48, %v5720_v63  ;;  %v2608_v53 = vmax.f32 %v2605_v49, 0.0  ;;  %4516 = vmatprep.subr.bf16.mxu0 %v4866_v46  ;;  %v4870_v63 = vld [vmem:[#allocation19 + $0x120] sm:$0xff]  }
 0x491   : > { %v3972_v55 = vpack.c.bf16 %v2612_v50, %v2612_v50  ;;  %4509 = vmatmul.mubr.bf16.vlgmr.msra.gmra.mrb[32].mxu1 %v3097_v16  ;;  %v4869_v16 = vld [vmem:[#allocation19 + $0x158] sm:$0xff]  }
 0x492   : > { %v3970_v56 = vpack.c.bf16 %v2610_v52, %v2610_v52  ;;  %v2611_v57 = vmul.f32 %v2608_v53, %v5728_v25  ;;  %4533 = vmatpush3.bf16.msra.mxu1 %v4863_v43 }
 0x493   : > { %v2643_v29 = vshll.u32 %v3972_v55, 16  ;;  %v2647_v58 = vshrl.u32 %v3972_v55, 16  ;;  %4534 = vmatprep.subr.bf16.mxu1 %v4865_v51  ;;  %4517 = vmatpush3.bf16.msra.mxu0 %v4866_v46 }
 0x494   : > { %v2624_v59 = vshll.u32 %v3970_v56, 16  ;;  %v2627_v62 = vshrl.u32 %v3970_v56, 16  ;;  %v3971_v2 = vpack.c.bf16 %v2611_v57, %v2611_v57  ;;  %4518 = vmatprep.subr.bf16.mxu0 %v4868_v54 }
 0x495   : > { %v2645_v3 = vrot.slane %v2643_v29, 5  ;;  %v2649_v4 = vrot.slane %v2647_v58, 4 }
 0x496   : > { %v2626_v60 = vrot.slane %v2624_v59, 5  ;;  %v2629_v24 = vrot.slane %v2627_v62, 4  ;;  %v2633_v6 = vshll.u32 %v3971_v2, 16  ;;  %v2637_v7 = vshrl.u32 %v3971_v2, 16  ;;  %4535 = vmatpush3.bf16.msra.mxu1 %v4865_v51 }
 0x497   : > { %v2650_v25 = vor.u32 %v2649_v4, %v2645_v3  ;;  %4536 = vmatprep.subr.bf16.mxu1 %v4867_v0  ;;  %4519 = vmatpush3.bf16.msra.mxu0 %v4868_v54 }
 0x498   : > { %v2630_v8 = vor.u32 %v2629_v24, %v2626_v60  ;;  %v2657_v9 = vsel %vm5734_vm13, %v2626_v60, %v2656_v5  ;;  %v2635_v61 = vrot.slane %v2633_v6, 5  ;;  %v2639_v10 = vrot.slane %v2637_v7, 4  ;;  %4520 = vmatprep.subr.bf16.mxu0 %v4870_v63 }
 0x499   : > { %v2651_v13 = vrot.slane %v2650_v25, 4  ;;  %2658 = vst [vmem:[#allocation4 + $0x14] sm:$0x8] %v2657_v9 }
 0x49a   : > { %v2631_v14 = vrot.slane %v2630_v8, 4  ;;  %v2640_v18 = vor.u32 %v2639_v10, %v2635_v61  ;;  %4537 = vmatpush3.bf16.msra.mxu1 %v4867_v0 }
 0x49b   : > { %v2662_v17 = vsel %vm5750_vm15, %v2651_v13, %v2661_v15  ;;  %4538 = vmatprep.subr.bf16.mxu1 %v4869_v16  ;;  %4521 = vmatpush3.bf16.msra.mxu0 %v4870_v63 }
 0x49c   : > { %2663 = vst [vmem:[#allocation4 + $0x20] sm:$0x7] %v2662_v17  ;;  %v2636_v20 = vsel %vm5744_vm14, %v2631_v14, %v2635_v61  ;;  %v2641_v21 = vrot.slane %v2640_v18, 4  ;;  %4522 = vmatprep.subr.bf16.mxu0 %v4872_v11  ;;  %v3948_v14 = vld [vmem:[#allocation20] ss:$0 sm:$0xff] }
 0x49d   : > { %2659 = vst [vmem:[#allocation4 + $0x18] sm:$0xf] %v2636_v20 }
 0x49e   : > { %v2646_v23 = vsel %vm5744_vm14, %v2641_v21, %v2645_v3  ;;  %4539 = vmatpush3.bf16.msra.mxu1 %v4869_v16 }
 0x49f   : > { %2660 = vst [vmem:[#allocation4 + $0x1c] sm:$0xf] %v2646_v23  ;;  %4540 = vmatprep.subr.bf16.mxu1 %v4871_v19  ;;  %4523 = vmatpush3.bf16.msra.mxu0 %v4872_v11 }
 0x4a0   : > { %4524 = vmatprep.subr.bf16.mxu0 %v4874_v22  ;;  %v3200_v30 = vld [vmem:[#allocation4 + $0x14] sm:$0x8] }
 0x4a2   : > { %4541 = vmatpush3.bf16.msra.mxu1 %v4871_v19 }
 0x4a3   : > { %4542 = vmatprep.subr.bf16.mxu1 %v4873_v26  ;;  %4525 = vmatpush3.bf16.msra.mxu0 %v4874_v22  ;;  %v3203_v35 = vld [vmem:[#allocation4 + $0x20] sm:$0x7] }
 0x4a4   : > { %v3201_v31 = vld [vmem:[#allocation4 + $0x18] sm:$0xf]  ;;  %4526 = vmatprep.subr.bf16.mxu0 %v4879_v27  ;;  %v3939_v50 = vcombine.low %v3203_v35, %v3203_v35 }
 0x4a5   : > { %v3928_v32 = vcombine.low %v3200_v30, %v3201_v31 }
 0x4a6   : > { %4543 = vmatpush3.bf16.msra.mxu1 %v4873_v26  ;;  %v3202_v33 = vld [vmem:[#allocation4 + $0x1c] sm:$0xf] }
 0x4a7   : > { %4544 = vmatprep.subr.bf16.mxu1 %v4875_v28  ;;  %v3929_v42 = vcombine.low %v3202_v33, %v3203_v35  ;;  %v3232_v37 = vshrl.u32 %v3928_v32, 16  ;;  %v3235_v38 = vshll.u32 %v3928_v32, 16  ;;  %v3938_v39 = vcombine.low %v3201_v31, %v3202_v33  ;;  %4527 = vmatpush3.bf16.msra.mxu0 %v4879_v27 }
 0x4a9   : > { %v3240_v40 = vshrl.u32 %v3929_v42, 16  ;;  %v3243_v34 = vshll.u32 %v3929_v42, 16  ;;  %4548 = vmatprep.mubr.bf16.mxu1 %v3938_v39  ;;  %v3234_v43 = vrot.slane %v3232_v37, 3  ;;  %v3237_v44 = vrot.slane %v3235_v38, 4 }
 0x4aa   : > { %4545 = vmatpush3.bf16.msra.mxu1 %v4875_v28 }
 0x4ab   : > { %4546 = vmatprep.subr.bf16.mxu1 %v4880_v36  ;;  %v3242_v45 = vrot.slane %v3240_v40, 3  ;;  %v3245_v46 = vrot.slane %v3243_v34, 4  ;;  %v3238_v47 = vor.u32 %v3237_v44, %v3234_v43 }
 0x4ad   : > { %v3246_v48 = vor.u32 %v3245_v46, %v3242_v45 }
 0x4ae   : > { %4547 = vmatpush3.bf16.msra.mxu1 %v4880_v36 }
 0x4af   : > { %v3247_v49 = vsel %vm580_vm0, %v3238_v47, %v3246_v48 }
 0x4b0   : > { %4528 = vmatprep.mubr.bf16.mxu0 %v3247_v49 }
 0x4b1   : > { %4529 = vmatmul.mubr.bf16.vlgmr.msra.gmra.mrb[36].mxu0 %v3246_v48  ;;  %4549 = vmatmul.mubr.bf16.vlgmr.msra.gmra.mrb[36].mxu1 %v3939_v50 }
 0x53d   : > { %v4450_v51 = vpop.f32.mrb[28].mxu0 }
 0x53e   : > { %v2793_v52 = vpop.f32.mrb[29].mxu0 }
 0x53f   : > { %v4451_v53 = vpop.f32.mrb[30].mxu0 }
 0x540   : > { %v2796_v54 = vpop.f32.mrb[31].mxu0 }
 0x544   : > { %v4470_v55 = vpop.f32.mrb[28].mxu1 }
 0x545   : > { %v2921_v56 = vadd.f32 %v4470_v55, %v4450_v51  ;;  %v2912_v57 = vpop.f32.mrb[29].mxu1 }
 0x546   : > { %v2913_v29 = vadd.f32 %v2912_v57, %v2793_v52  ;;  %v4471_v58 = vpop.f32.mrb[30].mxu1 }
 0x547   : > { %v2915_v0 = vpop.f32.mrb[31].mxu1 }
 0x548   : > { %v2916_v59 = vadd.f32 %v2915_v0, %v2796_v54  ;;  %v3539_v54 = vld [vmem:[%s500_s30] sm:$0x8]  ;;  %v3544_v0 = vld [vmem:[%s500_s30 + $0xc] sm:$0x7] }
 0x55d   : > { %v4490_v62 = vpop.f32.mrb[32].mxu0 }
 0x55e   : > { %v3074_v2 = vadd.f32 %v4490_v62, %v2921_v56  ;;  %v3058_v63 = vpop.f32.mrb[33].mxu0 }
 0x55f   : > { %v3072_v3 = vadd.f32 %v3058_v63, %v2913_v29  ;;  %v4491_v4 = vpop.f32.mrb[34].mxu0 }
 0x560   : > { %v3061_v5 = vpop.f32.mrb[35].mxu0 }
 0x561   : > { %v3073_v60 = vadd.f32 %v3061_v5, %v2916_v59 }
 0x564   : > { %v4510_v24 = vpop.f32.mrb[32].mxu1 }
 0x565   : > { %v3199_v6 = vadd.f32 %v4510_v24, %v3074_v2  ;;  %v3183_v7 = vpop.f32.mrb[33].mxu1 }
 0x566   : > { %v3197_v25 = vadd.f32 %v3183_v7, %v3072_v3  ;;  %v4511_v16 = vpop.f32.mrb[34].mxu1 }
 0x567   : > { %v3186_v15 = vpop.f32.mrb[35].mxu1 }
 0x568   : > { %v3198_v8 = vadd.f32 %v3186_v15, %v3073_v60 }
 0x584   : > { %v4530_v9 = vpop.f32.mrb[36].mxu0  ;;  %v4550_v61 = vpop.f32.mrb[36].mxu1 }
 0x585   : > { %v3348_v10 = vadd.f32 %v4530_v9, %v3199_v6  ;;  %v3332_v11 = vpop.f32.mrb[37].mxu0  ;;  %v3452_v13 = vpop.f32.mrb[37].mxu1 }
 0x586   : > { %v3346_v18 = vadd.f32 %v3332_v11, %v3197_v25  ;;  %v4531_v17 = vpop.f32.mrb[38].mxu0  ;;  %v4551_v19 = vpop.f32.mrb[38].mxu1 }
 0x587   : > { %v3468_v20 = vadd.f32 %v4550_v61, %v3348_v10  ;;  %v3335_v21 = vpop.f32.mrb[39].mxu0  ;;  %v3455_v22 = vpop.f32.mrb[39].mxu1 }
 0x588   : > { %v3466_v23 = vadd.f32 %v3452_v13, %v3346_v18  ;;  %v3347_v26 = vadd.f32 %v3335_v21, %v3198_v8 }
 0x589   : > { %v3477_v27 = vadd.f32 %v3948_v14, %v3468_v20 }
 0x58a   : > { %v3475_v28 = vadd.f32 %v3948_v14, %v3466_v23  ;;  %v3467_v30 = vadd.f32 %v3455_v22, %v3347_v26 }
 0x58b   : > { %v3951_v31 = vmul.f32 -1.442695, %v3477_v27 }
 0x58c   : > { %v3949_v32 = vmul.f32 -1.442695, %v3475_v28  ;;  %v3476_v33 = vadd.f32 %v3948_v14, %v3467_v30 }
 0x58d   : > { %4882 = vpow2.f32 %v3951_v31 }
 0x58e   : > { %4884 = vpow2.f32 %v3949_v32  ;;  %v3950_v35 = vmul.f32 -1.442695, %v3476_v33 }
 0x590   : > { %4886 = vpow2.f32 %v3950_v35 }
 0x597   : > { %v4883_v42 = vpop.eup %4882 }
 0x598   : > { %v4885_v37 = vpop.eup %4884  ;;  %v3489_v38 = vadd.f32 1.0, %v4883_v42 }
 0x599   : > { %v3487_v39 = vadd.f32 1.0, %v4885_v37 }
 0x59a   : > { %v4887_v36 = vpop.eup %4886  ;;  %4888 = vrcp.f32 %v3489_v38 }
 0x59b   : > { %4890 = vrcp.f32 %v3487_v39  ;;  %v3488_v40 = vadd.f32 1.0, %v4887_v36 }
 0x59d   : > { %4892 = vrcp.f32 %v3488_v40 }
 0x5a4   : > { %v4889_v34 = vpop.eup %4888 }
 0x5a5   : > { %v4891_v43 = vpop.eup %4890  ;;  %v3975_v44 = vpack.c.bf16 %v4889_v34, %v4889_v34 }
 0x5a6   : > { %v3973_v45 = vpack.c.bf16 %v4891_v43, %v4891_v43 }
 0x5a7   : > { %v4893_v46 = vpop.eup %4892  ;;  %v3526_v47 = vshll.u32 %v3975_v44, 16  ;;  %v3530_v48 = vshrl.u32 %v3975_v44, 16 }
 0x5a8   : > { %v3507_v49 = vshll.u32 %v3973_v45, 16  ;;  %v3510_v50 = vshrl.u32 %v3973_v45, 16  ;;  %v3974_v51 = vpack.c.bf16 %v4893_v46, %v4893_v46 }
 0x5a9   : > { %v3528_v52 = vrot.slane %v3526_v47, 5  ;;  %v3532_v53 = vrot.slane %v3530_v48, 4 }
 0x5aa   : > { %v3509_v55 = vrot.slane %v3507_v49, 5  ;;  %v3512_v56 = vrot.slane %v3510_v50, 4  ;;  %v3516_v57 = vshll.u32 %v3974_v51, 16  ;;  %v3520_v29 = vshrl.u32 %v3974_v51, 16 }
 0x5ab   : > { %v3533_v58 = vor.u32 %v3532_v53, %v3528_v52 }
 0x5ac   : > { %v3513_v59 = vor.u32 %v3512_v56, %v3509_v55  ;;  %v3540_v62 = vsel %vm5734_vm13, %v3509_v55, %v3539_v54  ;;  %v3518_v2 = vrot.slane %v3516_v57, 5  ;;  %v3522_v63 = vrot.slane %v3520_v29, 4 }
 0x5ad   : > { %v3534_v3 = vrot.slane %v3533_v58, 4  ;;  %3541 = vst [vmem:[%s500_s30] sm:$0x8] %v3540_v62 }
 0x5ae   : > { %v3514_v4 = vrot.slane %v3513_v59, 4  ;;  %v3523_v5 = vor.u32 %v3522_v63, %v3518_v2 }
 0x5af   : > { %v3545_v60 = vsel %vm5750_vm15, %v3534_v3, %v3544_v0 }
 0x5b0   : > { %3546 = vst [vmem:[%s500_s30 + $0xc] sm:$0x7] %v3545_v60  ;;  %v3519_v24 = vsel %vm5744_vm14, %v3514_v4, %v3518_v2  ;;  %v3524_v6 = vrot.slane %v3523_v5, 4 }
 0x5b1   : > { %3542 = vst [vmem:[%s500_s30 + $0x4] sm:$0xf] %v3519_v24 }
 0x5b2   : > { %v3529_v41 = vsel %vm5744_vm14, %v3524_v6, %v3528_v52 }
 0x5b3   : > { %3543 = vst [vmem:[%s500_s30 + $0x8] sm:$0xf] %v3529_v41 }
 0x5b4   : > { %5189 = shalt.err (!%p5186_p0)
}
 0x5b5   : > { %s5190_s28 = scalar_lea.hbm %s5893_s25, 320  ;;  %s5194_s22 = scalar_lea.hbm %s5997_s24, 640 }
 0x5b6   : > { %p5191_p5 = scmp.ne.s32.totalorder %s5893_s25, %s5190_s28  ;;  %p5195_p4 = scmp.lt.u32.totalorder %s5893_s25, %s5997_s24 }
 0x5b7   : > { %p5196_p12 = scmp.lt.u32.totalorder %s5194_s22, %s5190_s28  ;;  %p5198_p1 = scmp.lt.u32.totalorder %s5190_s28, %s5893_s25 }
 0x5b8   : > { %p5192_p9 = pnand %p5191_p5, %p5998_p3 }
 0x5b9   : > { %p5197_p13 = por %p5196_p12, %p5195_p4 }
 0x5ba   : > { %p5193_p7 = pneg %p5192_p9 }
 0x5bb   : > { %p5199_p2 = por %p5198_p1, %p5197_p13 }
 0x5bd   : > { %p5200_p8 = pnand %p5199_p2, %p5193_p7 }
 0x5bf   : > { %5203 = shalt.err (!%p5200_p8)
}
 0x5c0   : > { %s5280_s21 = smov 64   ;;  %s5281_s12 = smov 4  }
 0x5c1   : > { %4595 = dma.vmem_to_hbm [thread:$0]  (%p5998_p3), %s5895_s11, 320, %s5893_s25, %s3548_s19, %s5280_s21, %s5280_s21, %s5281_s12  }
 0x5c2 PF: > { %s3576_s1 = sand.u32 1, %s5250_s13   ;;  %p5999_p6 = scmp.ne.s32.totalorder %s5971_s20, 0 }
 0x5c3   : > { %p6000_p10 = scmp.ge.s32.totalorder %s5262_s16, 2  ;;  %s3577_s10 = scalar_lea.sflag [#allocation7], %s3576_s1 }
 0x5c5   : > { %p4630_p11 = pnand %p6000_p10, %p5999_p6 }
 0x5c7   : > { %5245 = dma.done.wait (!%p4630_p11), %s3577_s10, 320  }
 0x5c8   : > { %5247 = vsyncadd (!%p4630_p11), %s3577_s10, 4294966976  ;;  %p28_p0 = scmp.ge.s32.totalorder %s5581_s23, 4   ;;  %s6001_s13 = smov %s5254_s14 }
 0x5c9   : > { %s6002_s14 = smov %s5258_s15  ;;  %s6003_s15 = smov %s5593_s27 }
 0x5ca   : > { %s6004_s16 = smov %s5581_s23  ;;  %30 = sbr.rel (!%p28_p0) target bundleno = 14 (0xe), region = 159 }
 0x5d1   :  { %3582 = vsyncpa [#allocation6], 1 }
 0x5d2   :  { %3584 = vsyncpa [#allocation6 + $0x1], 1 }
 0x5d3   :  { %3585 = vsyncpa [#allocation9], 1 }
 0x5d4   :  { %3586 = vsyncpa [#allocation12], 1 }
 0x5d5   :  { %3587 = vsyncpa [#allocation15], 1 }
 0x5d6   :  { %3588 = vsyncpa [#allocation18], 1 }
 0x5d7   :  { %3589 = vsyncpa [#allocation21], 1 }
 0x5d8   :  { %3590 = vsyncpa [#allocation7], 1 }
 0x5d9   :  { %3592 = vsyncpa [#allocation7 + $0x1], 1 }

</bundles_post_ra>
